<compile_context>
chip_gen: v7x
topology: tpu7x:2x2x1
jax: 0.10.0
libtpu: 0.0.40
codegen_flags: <defaults>
</compile_context>

<pallas_src>
import jax
import jax.numpy as jnp
from jax.experimental import pallas as pl
from jax.experimental.pallas import tpu as pltpu


def decoder_kernel(emb_ref, h_ref, enc_ref,
                   w_h_ref, w_e_ref, b_attn_ref, v_ref,
                   w_ih_e_ref, w_ih_c_ref, b_ih_ref, w_hh_ref, b_hh_ref,
                   w_fc_h_ref, w_fc_e_ref, w_fc_c_ref, b_fc_ref,
                   pred_ref, h_out_ref,
                   h_new_sc, ctx_sc):
    j = pl.program_id(0)

    # ---- Attention + GRU: computed once, results parked in VMEM scratch -----
    @pl.when(j == 0)
    def _():
        emb = emb_ref[...]                         # (B, E)  bf16
        h_f32 = h_ref[...]                         # (B, H)  f32
        h_b = h_f32.astype(jnp.bfloat16)
        enc = enc_ref[...]                         # (B, S, H) bf16
        B, S, H = enc.shape

        # energy = tanh(cat(hidden, enc) @ W_attn + b)
        #        = tanh(hidden @ w_h + enc @ w_e + b)
        hid_proj = jnp.dot(h_b, w_h_ref[...],
                           preferred_element_type=jnp.float32)          # (B, H)
        enc_proj = jnp.dot(enc.reshape(B * S, H), w_e_ref[...],
                           preferred_element_type=jnp.float32)          # (B*S, H)
        enc_proj = enc_proj.reshape(B, S, H)
        energy = jnp.tanh(hid_proj[:, None, :] + enc_proj
                          + b_attn_ref[...][None, :, :])                 # (B, S, H)

        # scores = energy @ v  -> (B, S);  softmax over S
        scores = jnp.sum(energy * v_ref[...][None, :, :], axis=2)        # (B, S)
        m = jnp.max(scores, axis=1, keepdims=True)
        e = jnp.exp(scores - m)
        attn_w = e / jnp.sum(e, axis=1, keepdims=True)                   # (B, S)

        # context = bmm(attn_w.unsqueeze(1), enc).squeeze(1)
        context = jnp.sum(attn_w[:, :, None] * enc.astype(jnp.float32),
                          axis=1)                                        # (B, H) f32

        # GRU single step (PyTorch gate order r, z, n), split-weight form
        ctx_b = context.astype(jnp.bfloat16)
        gx = (jnp.dot(emb, w_ih_e_ref[...], preferred_element_type=jnp.float32)
              + jnp.dot(ctx_b, w_ih_c_ref[...], preferred_element_type=jnp.float32)
              + b_ih_ref[...])                                           # (B, 3H)
        gh = (jnp.dot(h_b, w_hh_ref[...], preferred_element_type=jnp.float32)
              + b_hh_ref[...])                                           # (B, 3H)
        rx, zx, nx = gx[:, :H], gx[:, H:2 * H], gx[:, 2 * H:]
        rh, zh, nh = gh[:, :H], gh[:, H:2 * H], gh[:, 2 * H:]
        r = jax.nn.sigmoid(rx + rh)
        z = jax.nn.sigmoid(zx + zh)
        n = jnp.tanh(nx + r * nh)
        h_new = (1.0 - z) * n + z * h_f32                                # (B, H) f32

        h_out_ref[...] = h_new
        h_new_sc[...] = h_new
        ctx_sc[...] = context

    # ---- Output projection for this vocab tile (split-weight, no concat) ----
    emb = emb_ref[...]                                                   # bf16
    h_new_b = h_new_sc[...].astype(jnp.bfloat16)
    ctx_b = ctx_sc[...].astype(jnp.bfloat16)
    pred = (jnp.dot(h_new_b, w_fc_h_ref[...], preferred_element_type=jnp.float32)
            + jnp.dot(emb, w_fc_e_ref[...], preferred_element_type=jnp.float32)
            + jnp.dot(ctx_b, w_fc_c_ref[...], preferred_element_type=jnp.float32)
            + b_fc_ref[...])                                             # (B, TILE_O)
    pred_ref[...] = pred


def _resident(shape):
    """Full-array block that stays VMEM-resident across the vocab grid."""
    n = len(shape)
    return pl.BlockSpec(shape, lambda j, _n=n: (0,) * _n)


def decoder_forward(tokens, hidden, encoder_outputs, params, *, tile_o=128):
    """tokens (B,) int32, hidden (1,B,H) f32, encoder_outputs (B,S,H) f32."""
    B, S, H = encoder_outputs.shape
    E = params["embedding"].shape[1]
    O = params["w_fc_h"].shape[1]
    assert O % tile_o == 0, "toy demo assumes vocab is a multiple of tile_o"
    n_o_tiles = pl.cdiv(O, tile_o)

    bf16 = jnp.bfloat16
    # glue: embedding gather outside the kernel
    embedded = params["embedding"][tokens].astype(bf16)      # (B, E)
    h0 = hidden[0]                                           # (B, H) f32
    enc_b = encoder_outputs.astype(bf16)                     # (B, S, H)

    # bf16 weights feeding the MXU; f32 biases / attention vector
    w_h = params["w_h"].astype(bf16)
    w_e = params["w_e"].astype(bf16)
    w_ih_e = params["w_ih_e"].astype(bf16)
    w_ih_c = params["w_ih_c"].astype(bf16)
    w_hh = params["w_hh"].astype(bf16)
    w_fc_h = params["w_fc_h"].astype(bf16)
    w_fc_e = params["w_fc_e"].astype(bf16)
    w_fc_c = params["w_fc_c"].astype(bf16)

    in_specs = [
        _resident((B, E)),                                   # embedded
        _resident((B, H)),                                   # h0
        _resident((B, S, H)),                                # encoder outputs
        _resident((H, H)),                                   # w_h
        _resident((H, H)),                                   # w_e
        _resident((1, H)),                                   # b_attn
        _resident((1, H)),                                   # v
        _resident((E, 3 * H)),                               # w_ih_e
        _resident((H, 3 * H)),                               # w_ih_c
        _resident((1, 3 * H)),                               # b_ih
        _resident((H, 3 * H)),                               # w_hh
        _resident((1, 3 * H)),                               # b_hh
        pl.BlockSpec((H, tile_o), lambda j: (0, j)),         # w_fc_h  (streamed)
        pl.BlockSpec((E, tile_o), lambda j: (0, j)),         # w_fc_e  (streamed)
        pl.BlockSpec((H, tile_o), lambda j: (0, j)),         # w_fc_c  (streamed)
        pl.BlockSpec((1, tile_o), lambda j: (0, j)),         # b_fc    (streamed)
    ]
    out_specs = (
        pl.BlockSpec((B, tile_o), lambda j: (0, j)),         # prediction tile
        pl.BlockSpec((B, H), lambda j: (0, 0)),              # new hidden (resident)
    )

    pred, h_new = pl.pallas_call(
        decoder_kernel,
        out_shape=(jax.ShapeDtypeStruct((B, O), jnp.float32),
                   jax.ShapeDtypeStruct((B, H), jnp.float32)),
        grid_spec=pltpu.PrefetchScalarGridSpec(
            num_scalar_prefetch=0,
            grid=(n_o_tiles,),
            in_specs=in_specs,
            out_specs=out_specs,
            scratch_shapes=[pltpu.VMEM((B, H), jnp.float32),   # h_new
                            pltpu.VMEM((B, H), jnp.float32)],  # context
        ),
        # vocab axis is sequential: tiles after j=0 reuse the scratch results
        compiler_params=pltpu.CompilerParams(
            dimension_semantics=("arbitrary",)),
        # in-place hidden-state update (input 1 -> output 1)
        input_output_aliases={1: 1},
    )(embedded, h0, enc_b,
      w_h, w_e, params["b_attn"], params["v"],
      w_ih_e, w_ih_c, params["b_ih"], w_hh, params["b_hh"],
      w_fc_h, w_fc_e, w_fc_c, params["b_fc"])

    return pred, h_new[None]                                 # ((B,O), (1,B,H))


def init_params(key, output_dim, embed_dim, hidden_dim):
    H, E, O = hidden_dim, embed_dim, output_dim
    ks = jax.random.split(key, 12)
    s = 0.1
    nrm = lambda k, shp: s * jax.random.normal(k, shp, jnp.float32)
    return {
        # nn.Embedding(O, E)
        "embedding": nrm(ks[0], (O, E)),
        # Attention: nn.Linear(2H, H) stored split + transposed (in, out)
        "w_h": nrm(ks[1], (H, H)),
        "w_e": nrm(ks[2], (H, H)),
        "b_attn": nrm(ks[3], (1, H)),
        # nn.Linear(H, 1, bias=False) stored as (1, H)
        "v": nrm(ks[4], (1, H)),
        # GRU(E + H, H): weights stored (in, 3H), gate order r,z,n, split by input
        "w_ih_e": nrm(ks[5], (E, 3 * H)),
        "w_ih_c": nrm(ks[6], (H, 3 * H)),
        "b_ih": jnp.zeros((1, 3 * H), jnp.float32),
        "w_hh": nrm(ks[7], (H, 3 * H)),
        "b_hh": jnp.zeros((1, 3 * H), jnp.float32),
        # fc_out: nn.Linear(2H + E, O) stored (in, out), split by cat(h, emb, ctx)
        "w_fc_h": nrm(ks[8], (H, O)),
        "w_fc_e": nrm(ks[9], (E, O)),
        "w_fc_c": nrm(ks[10], (H, O)),
        "b_fc": nrm(ks[11], (1, O)),
    }


if __name__ == "__main__":
    # Small shapes consistent with the module (HIDDEN_DIM = 128 in the spec);
    # E / O chosen 128-aligned so every lane slice and store is dense.
    B, S, H, E, O = 2, 8, 128, 128, 256

    key = jax.random.PRNGKey(0)
    k_tok, k_h, k_enc, k_par = jax.random.split(key, 4)

    tokens = jax.random.randint(k_tok, (B,), 0, O, dtype=jnp.int32)
    hidden = jax.random.normal(k_h, (1, B, H), jnp.float32)
    encoder_outputs = jax.random.normal(k_enc, (B, S, H), jnp.float32)
    params = init_params(k_par, O, E, H)

    prediction, new_hidden = decoder_forward(tokens, hidden, encoder_outputs, params)
    jax.block_until_ready((prediction, new_hidden))

    assert prediction.shape == (B, O)
    assert new_hidden.shape == (1, B, H)
    assert bool(jnp.all(jnp.isfinite(prediction)))
    assert bool(jnp.all(jnp.isfinite(new_hidden)))
    print("KERNEL_OK")
</pallas_src>

<mosaic_0001>
module attributes {stable_mosaic.version = 11 : i64} {
  func.func @decoder_kernel(%arg0: i32, %arg1: memref<2x128xbf16, #tpu.memory_space<vmem>>, %arg2: memref<2x128xf32, #tpu.memory_space<vmem>>, %arg3: memref<2x8x128xbf16, #tpu.memory_space<vmem>>, %arg4: memref<128x128xbf16, #tpu.memory_space<vmem>>, %arg5: memref<128x128xbf16, #tpu.memory_space<vmem>>, %arg6: memref<1x128xf32, #tpu.memory_space<vmem>>, %arg7: memref<1x128xf32, #tpu.memory_space<vmem>>, %arg8: memref<128x384xbf16, #tpu.memory_space<vmem>>, %arg9: memref<128x384xbf16, #tpu.memory_space<vmem>>, %arg10: memref<1x384xf32, #tpu.memory_space<vmem>>, %arg11: memref<128x384xbf16, #tpu.memory_space<vmem>>, %arg12: memref<1x384xf32, #tpu.memory_space<vmem>>, %arg13: memref<128x128xbf16, #tpu.memory_space<vmem>>, %arg14: memref<128x128xbf16, #tpu.memory_space<vmem>>, %arg15: memref<128x128xbf16, #tpu.memory_space<vmem>>, %arg16: memref<1x128xf32, #tpu.memory_space<vmem>>, %arg17: memref<2x128xf32, #tpu.memory_space<vmem>>, %arg18: memref<2x128xf32, #tpu.memory_space<vmem>>, %arg19: memref<2x128xf32, #tpu.memory_space<vmem>>, %arg20: memref<2x128xf32, #tpu.memory_space<vmem>>) attributes {dimension_semantics = [#tpu.dimension_semantics<arbitrary>], iteration_bounds = array<i64: 2>, scalar_prefetch = 0 : i64, scratch_operands = 2 : i64, tpu.core_type = #tpu.core_type<tc>, window_params = [{pipeline_mode = #tpu.pipeline_mode<synchronous>, transform_indices = @transform_0, window_bounds = array<i64: 2, 128>}, {pipeline_mode = #tpu.pipeline_mode<synchronous>, transform_indices = @transform_1, window_bounds = array<i64: 2, 128>}, {pipeline_mode = #tpu.pipeline_mode<synchronous>, transform_indices = @transform_2, window_bounds = array<i64: 2, 8, 128>}, {pipeline_mode = #tpu.pipeline_mode<synchronous>, transform_indices = @transform_3, window_bounds = array<i64: 128, 128>}, {pipeline_mode = #tpu.pipeline_mode<synchronous>, transform_indices = @transform_4, window_bounds = array<i64: 128, 128>}, {pipeline_mode = #tpu.pipeline_mode<synchronous>, transform_indices = @transform_5, window_bounds = array<i64: 1, 128>}, {pipeline_mode = #tpu.pipeline_mode<synchronous>, transform_indices = @transform_6, window_bounds = array<i64: 1, 128>}, {pipeline_mode = #tpu.pipeline_mode<synchronous>, transform_indices = @transform_7, window_bounds = array<i64: 128, 384>}, {pipeline_mode = #tpu.pipeline_mode<synchronous>, transform_indices = @transform_8, window_bounds = array<i64: 128, 384>}, {pipeline_mode = #tpu.pipeline_mode<synchronous>, transform_indices = @transform_9, window_bounds = array<i64: 1, 384>}, {pipeline_mode = #tpu.pipeline_mode<synchronous>, transform_indices = @transform_10, window_bounds = array<i64: 128, 384>}, {pipeline_mode = #tpu.pipeline_mode<synchronous>, transform_indices = @transform_11, window_bounds = array<i64: 1, 384>}, {transform_indices = @transform_12, window_bounds = array<i64: 128, 128>}, {transform_indices = @transform_13, window_bounds = array<i64: 128, 128>}, {transform_indices = @transform_14, window_bounds = array<i64: 128, 128>}, {transform_indices = @transform_15, window_bounds = array<i64: 1, 128>}, {transform_indices = @transform_16, window_bounds = array<i64: 2, 128>}, {pipeline_mode = #tpu.pipeline_mode<synchronous>, transform_indices = @transform_17, window_bounds = array<i64: 2, 128>}]} {
    %c0_i32 = arith.constant 0 : i32
    %0 = arith.cmpi eq, %arg0, %c0_i32 : i32
    %1 = arith.extui %0 : i1 to i32
    %c0_i32_0 = arith.constant 0 : i32
    %2 = arith.cmpi ne, %1, %c0_i32_0 : i32
    scf.if %2 {
      %c0_18 = arith.constant 0 : index
      %c0_19 = arith.constant 0 : index
      %20 = vector.load %arg1[%c0_18, %c0_19] : memref<2x128xbf16, #tpu.memory_space<vmem>>, vector<2x128xbf16>
      %c0_20 = arith.constant 0 : index
      %c0_21 = arith.constant 0 : index
      %21 = vector.load %arg2[%c0_20, %c0_21] : memref<2x128xf32, #tpu.memory_space<vmem>>, vector<2x128xf32>
      %22 = arith.truncf %21 : vector<2x128xf32> to vector<2x128xbf16>
      %c0_22 = arith.constant 0 : index
      %c0_23 = arith.constant 0 : index
      %c0_24 = arith.constant 0 : index
      %23 = vector.load %arg3[%c0_22, %c0_23, %c0_24] : memref<2x8x128xbf16, #tpu.memory_space<vmem>>, vector<2x8x128xbf16>
      %c0_25 = arith.constant 0 : index
      %c0_26 = arith.constant 0 : index
      %24 = vector.load %arg4[%c0_25, %c0_26] : memref<128x128xbf16, #tpu.memory_space<vmem>>, vector<128x128xbf16>
      %cst_27 = arith.constant dense<0.000000e+00> : vector<2x128xf32>
      %25 = tpu.matmul %22, %24, %cst_27 {dimension_numbers = #tpu.dot_dimension_numbers<[1], [0], [0], [1], [0, 0, 1, 1], [], []>} : vector<2x128xbf16>, vector<128x128xbf16>, vector<2x128xf32> -> vector<2x128xf32>
      %26 = vector.shape_cast %23 : vector<2x8x128xbf16> to vector<16x128xbf16>
      %c0_28 = arith.constant 0 : index
      %c0_29 = arith.constant 0 : index
      %27 = vector.load %arg5[%c0_28, %c0_29] : memref<128x128xbf16, #tpu.memory_space<vmem>>, vector<128x128xbf16>
      %cst_30 = arith.constant dense<0.000000e+00> : vector<16x128xf32>
      %28 = tpu.matmul %26, %27, %cst_30 {dimension_numbers = #tpu.dot_dimension_numbers<[1], [0], [0], [1], [0, 0, 1, 1], [], []>} : vector<16x128xbf16>, vector<128x128xbf16>, vector<16x128xf32> -> vector<16x128xf32>
      %29 = vector.shape_cast %28 : vector<16x128xf32> to vector<2x8x128xf32>
      %30 = vector.shape_cast %25 : vector<2x128xf32> to vector<2x1x128xf32>
      %31 = vector.broadcast %30 : vector<2x1x128xf32> to vector<2x8x128xf32>
      %32 = arith.addf %31, %29 : vector<2x8x128xf32>
      %c0_31 = arith.constant 0 : index
      %c0_32 = arith.constant 0 : index
      %33 = vector.load %arg6[%c0_31, %c0_32] : memref<1x128xf32, #tpu.memory_space<vmem>>, vector<1x128xf32>
      %34 = vector.shape_cast %33 : vector<1x128xf32> to vector<1x1x128xf32>
      %35 = vector.broadcast %34 : vector<1x1x128xf32> to vector<2x8x128xf32>
      %36 = arith.addf %32, %35 : vector<2x8x128xf32>
      %37 = math.tanh %36 : vector<2x8x128xf32>
      %c0_33 = arith.constant 0 : index
      %c0_34 = arith.constant 0 : index
      %38 = vector.load %arg7[%c0_33, %c0_34] : memref<1x128xf32, #tpu.memory_space<vmem>>, vector<1x128xf32>
      %39 = vector.shape_cast %38 : vector<1x128xf32> to vector<1x1x128xf32>
      %40 = vector.broadcast %39 : vector<1x1x128xf32> to vector<2x8x128xf32>
      %41 = arith.mulf %37, %40 : vector<2x8x128xf32>
      %cst_35 = arith.constant dense<0.000000e+00> : vector<2x8xf32>
      %42 = vector.multi_reduction <add>, %41, %cst_35 [2] : vector<2x8x128xf32> to vector<2x8xf32>
      %cst_36 = arith.constant dense<0xFF800000> : vector<2xf32>
      %43 = vector.multi_reduction <maximumf>, %42, %cst_36 [1] : vector<2x8xf32> to vector<2xf32>
      %44 = vector.shape_cast %43 : vector<2xf32> to vector<2x1xf32>
      %45 = vector.broadcast %44 : vector<2x1xf32> to vector<2x8xf32>
      %46 = arith.subf %42, %45 : vector<2x8xf32>
      %47 = math.exp %46 : vector<2x8xf32>
      %cst_37 = arith.constant dense<0.000000e+00> : vector<2xf32>
      %48 = vector.multi_reduction <add>, %47, %cst_37 [1] : vector<2x8xf32> to vector<2xf32>
      %49 = vector.shape_cast %48 : vector<2xf32> to vector<2x1xf32>
      %50 = vector.broadcast %49 : vector<2x1xf32> to vector<2x8xf32>
      %51 = arith.divf %47, %50 : vector<2x8xf32>
      %52 = vector.shape_cast %51 : vector<2x8xf32> to vector<2x8x1xf32>
      %53 = arith.extf %23 : vector<2x8x128xbf16> to vector<2x8x128xf32>
      %54 = vector.broadcast %52 : vector<2x8x1xf32> to vector<2x8x128xf32>
      %55 = arith.mulf %54, %53 : vector<2x8x128xf32>
      %cst_38 = arith.constant dense<0.000000e+00> : vector<2x128xf32>
      %56 = vector.multi_reduction <add>, %55, %cst_38 [1] : vector<2x8x128xf32> to vector<2x128xf32>
      %57 = arith.truncf %56 : vector<2x128xf32> to vector<2x128xbf16>
      %c0_39 = arith.constant 0 : index
      %c0_40 = arith.constant 0 : index
      %58 = vector.load %arg8[%c0_39, %c0_40] : memref<128x384xbf16, #tpu.memory_space<vmem>>, vector<128x384xbf16>
      %cst_41 = arith.constant dense<0.000000e+00> : vector<2x384xf32>
      %59 = tpu.matmul %20, %58, %cst_41 {dimension_numbers = #tpu.dot_dimension_numbers<[1], [0], [0], [1], [0, 0, 1, 1], [], []>} : vector<2x128xbf16>, vector<128x384xbf16>, vector<2x384xf32> -> vector<2x384xf32>
      %c0_42 = arith.constant 0 : index
      %c0_43 = arith.constant 0 : index
      %60 = vector.load %arg9[%c0_42, %c0_43] : memref<128x384xbf16, #tpu.memory_space<vmem>>, vector<128x384xbf16>
      %cst_44 = arith.constant dense<0.000000e+00> : vector<2x384xf32>
      %61 = tpu.matmul %57, %60, %cst_44 {dimension_numbers = #tpu.dot_dimension_numbers<[1], [0], [0], [1], [0, 0, 1, 1], [], []>} : vector<2x128xbf16>, vector<128x384xbf16>, vector<2x384xf32> -> vector<2x384xf32>
      %62 = arith.addf %59, %61 : vector<2x384xf32>
      %c0_45 = arith.constant 0 : index
      %c0_46 = arith.constant 0 : index
      %63 = vector.load %arg10[%c0_45, %c0_46] : memref<1x384xf32, #tpu.memory_space<vmem>>, vector<1x384xf32>
      %64 = vector.broadcast %63 : vector<1x384xf32> to vector<2x384xf32>
      %65 = arith.addf %62, %64 : vector<2x384xf32>
      %c0_47 = arith.constant 0 : index
      %c0_48 = arith.constant 0 : index
      %66 = vector.load %arg11[%c0_47, %c0_48] : memref<128x384xbf16, #tpu.memory_space<vmem>>, vector<128x384xbf16>
      %cst_49 = arith.constant dense<0.000000e+00> : vector<2x384xf32>
      %67 = tpu.matmul %22, %66, %cst_49 {dimension_numbers = #tpu.dot_dimension_numbers<[1], [0], [0], [1], [0, 0, 1, 1], [], []>} : vector<2x128xbf16>, vector<128x384xbf16>, vector<2x384xf32> -> vector<2x384xf32>
      %c0_50 = arith.constant 0 : index
      %c0_51 = arith.constant 0 : index
      %68 = vector.load %arg12[%c0_50, %c0_51] : memref<1x384xf32, #tpu.memory_space<vmem>>, vector<1x384xf32>
      %69 = vector.broadcast %68 : vector<1x384xf32> to vector<2x384xf32>
      %70 = arith.addf %67, %69 : vector<2x384xf32>
      %71 = vector.extract_strided_slice %65 {offsets = [0, 0], sizes = [2, 128], strides = [1, 1]} : vector<2x384xf32> to vector<2x128xf32>
      %72 = vector.extract_strided_slice %65 {offsets = [0, 128], sizes = [2, 128], strides = [1, 1]} : vector<2x384xf32> to vector<2x128xf32>
      %73 = vector.extract_strided_slice %65 {offsets = [0, 256], sizes = [2, 128], strides = [1, 1]} : vector<2x384xf32> to vector<2x128xf32>
      %74 = vector.extract_strided_slice %70 {offsets = [0, 0], sizes = [2, 128], strides = [1, 1]} : vector<2x384xf32> to vector<2x128xf32>
      %75 = vector.extract_strided_slice %70 {offsets = [0, 128], sizes = [2, 128], strides = [1, 1]} : vector<2x384xf32> to vector<2x128xf32>
      %76 = vector.extract_strided_slice %70 {offsets = [0, 256], sizes = [2, 128], strides = [1, 1]} : vector<2x384xf32> to vector<2x128xf32>
      %77 = arith.addf %71, %74 : vector<2x128xf32>
      %78 = arith.negf %77 : vector<2x128xf32>
      %79 = math.exp %78 : vector<2x128xf32>
      %cst_52 = arith.constant 1.000000e+00 : f32
      %80 = vector.broadcast %cst_52 : f32 to vector<2x128xf32>
      %81 = arith.addf %80, %79 : vector<2x128xf32>
      %82 = arith.divf %80, %81 : vector<2x128xf32>
      %83 = arith.addf %72, %75 : vector<2x128xf32>
      %84 = arith.negf %83 : vector<2x128xf32>
      %85 = math.exp %84 : vector<2x128xf32>
      %cst_53 = arith.constant 1.000000e+00 : f32
      %86 = vector.broadcast %cst_53 : f32 to vector<2x128xf32>
      %87 = arith.addf %86, %85 : vector<2x128xf32>
      %88 = arith.divf %86, %87 : vector<2x128xf32>
      %89 = arith.mulf %82, %76 : vector<2x128xf32>
      %90 = arith.addf %73, %89 : vector<2x128xf32>
      %91 = math.tanh %90 : vector<2x128xf32>
      %cst_54 = arith.constant 1.000000e+00 : f32
      %92 = vector.broadcast %cst_54 : f32 to vector<2x128xf32>
      %93 = arith.subf %92, %88 : vector<2x128xf32>
      %94 = arith.mulf %93, %91 : vector<2x128xf32>
      %95 = arith.mulf %88, %21 : vector<2x128xf32>
      %96 = arith.addf %94, %95 : vector<2x128xf32>
      %c0_55 = arith.constant 0 : index
      %c0_56 = arith.constant 0 : index
      %97 = vector.load %arg18[%c0_55, %c0_56] : memref<2x128xf32, #tpu.memory_space<vmem>>, vector<2x128xf32>
      tpu.vector_store %arg18[%c0_55, %c0_56], %96 {strides = array<i32>} : memref<2x128xf32, #tpu.memory_space<vmem>>, vector<2x128xf32>,
      %c0_57 = arith.constant 0 : index
      %c0_58 = arith.constant 0 : index
      %98 = vector.load %arg19[%c0_57, %c0_58] : memref<2x128xf32, #tpu.memory_space<vmem>>, vector<2x128xf32>
      tpu.vector_store %arg19[%c0_57, %c0_58], %96 {strides = array<i32>} : memref<2x128xf32, #tpu.memory_space<vmem>>, vector<2x128xf32>,
      %c0_59 = arith.constant 0 : index
      %c0_60 = arith.constant 0 : index
      %99 = vector.load %arg20[%c0_59, %c0_60] : memref<2x128xf32, #tpu.memory_space<vmem>>, vector<2x128xf32>
      tpu.vector_store %arg20[%c0_59, %c0_60], %56 {strides = array<i32>} : memref<2x128xf32, #tpu.memory_space<vmem>>, vector<2x128xf32>,
    } else {
    }
    %c0 = arith.constant 0 : index
    %c0_1 = arith.constant 0 : index
    %3 = vector.load %arg1[%c0, %c0_1] : memref<2x128xbf16, #tpu.memory_space<vmem>>, vector<2x128xbf16>
    %c0_2 = arith.constant 0 : index
    %c0_3 = arith.constant 0 : index
    %4 = vector.load %arg19[%c0_2, %c0_3] : memref<2x128xf32, #tpu.memory_space<vmem>>, vector<2x128xf32>
    %5 = arith.truncf %4 : vector<2x128xf32> to vector<2x128xbf16>
    %c0_4 = arith.constant 0 : index
    %c0_5 = arith.constant 0 : index
    %6 = vector.load %arg20[%c0_4, %c0_5] : memref<2x128xf32, #tpu.memory_space<vmem>>, vector<2x128xf32>
    %7 = arith.truncf %6 : vector<2x128xf32> to vector<2x128xbf16>
    %c0_6 = arith.constant 0 : index
    %c0_7 = arith.constant 0 : index
    %8 = vector.load %arg13[%c0_6, %c0_7] : memref<128x128xbf16, #tpu.memory_space<vmem>>, vector<128x128xbf16>
    %cst = arith.constant dense<0.000000e+00> : vector<2x128xf32>
    %9 = tpu.matmul %5, %8, %cst {dimension_numbers = #tpu.dot_dimension_numbers<[1], [0], [0], [1], [0, 0, 1, 1], [], []>} : vector<2x128xbf16>, vector<128x128xbf16>, vector<2x128xf32> -> vector<2x128xf32>
    %c0_8 = arith.constant 0 : index
    %c0_9 = arith.constant 0 : index
    %10 = vector.load %arg14[%c0_8, %c0_9] : memref<128x128xbf16, #tpu.memory_space<vmem>>, vector<128x128xbf16>
    %cst_10 = arith.constant dense<0.000000e+00> : vector<2x128xf32>
    %11 = tpu.matmul %3, %10, %cst_10 {dimension_numbers = #tpu.dot_dimension_numbers<[1], [0], [0], [1], [0, 0, 1, 1], [], []>} : vector<2x128xbf16>, vector<128x128xbf16>, vector<2x128xf32> -> vector<2x128xf32>
    %12 = arith.addf %9, %11 : vector<2x128xf32>
    %c0_11 = arith.constant 0 : index
    %c0_12 = arith.constant 0 : index
    %13 = vector.load %arg15[%c0_11, %c0_12] : memref<128x128xbf16, #tpu.memory_space<vmem>>, vector<128x128xbf16>
    %cst_13 = arith.constant dense<0.000000e+00> : vector<2x128xf32>
    %14 = tpu.matmul %7, %13, %cst_13 {dimension_numbers = #tpu.dot_dimension_numbers<[1], [0], [0], [1], [0, 0, 1, 1], [], []>} : vector<2x128xbf16>, vector<128x128xbf16>, vector<2x128xf32> -> vector<2x128xf32>
    %15 = arith.addf %12, %14 : vector<2x128xf32>
    %c0_14 = arith.constant 0 : index
    %c0_15 = arith.constant 0 : index
    %16 = vector.load %arg16[%c0_14, %c0_15] : memref<1x128xf32, #tpu.memory_space<vmem>>, vector<1x128xf32>
    %17 = vector.broadcast %16 : vector<1x128xf32> to vector<2x128xf32>
    %18 = arith.addf %15, %17 : vector<2x128xf32>
    %c0_16 = arith.constant 0 : index
    %c0_17 = arith.constant 0 : index
    %19 = vector.load %arg17[%c0_16, %c0_17] : memref<2x128xf32, #tpu.memory_space<vmem>>, vector<2x128xf32>
    tpu.vector_store %arg17[%c0_16, %c0_17], %18 {strides = array<i32>} : memref<2x128xf32, #tpu.memory_space<vmem>>, vector<2x128xf32>,
    return
  }
  func.func @transform_0(%arg0: i32) -> (i32, i32) {
    %c0_i32 = arith.constant 0 : i32
    %c0_i32_0 = arith.constant 0 : i32
    %c0_i32_1 = arith.constant 0 : i32
    return %c0_i32, %c0_i32_0 : i32, i32
  }
  func.func @transform_1(%arg0: i32) -> (i32, i32) {
    %c0_i32 = arith.constant 0 : i32
    %c0_i32_0 = arith.constant 0 : i32
    %c0_i32_1 = arith.constant 0 : i32
    return %c0_i32, %c0_i32_0 : i32, i32
  }
  func.func @transform_2(%arg0: i32) -> (i32, i32, i32) {
    %c0_i32 = arith.constant 0 : i32
    %c0_i32_0 = arith.constant 0 : i32
    %c0_i32_1 = arith.constant 0 : i32
    %c0_i32_2 = arith.constant 0 : i32
    return %c0_i32, %c0_i32_0, %c0_i32_1 : i32, i32, i32
  }
  func.func @transform_3(%arg0: i32) -> (i32, i32) {
    %c0_i32 = arith.constant 0 : i32
    %c0_i32_0 = arith.constant 0 : i32
    %c0_i32_1 = arith.constant 0 : i32
    return %c0_i32, %c0_i32_0 : i32, i32
  }
  func.func @transform_4(%arg0: i32) -> (i32, i32) {
    %c0_i32 = arith.constant 0 : i32
    %c0_i32_0 = arith.constant 0 : i32
    %c0_i32_1 = arith.constant 0 : i32
    return %c0_i32, %c0_i32_0 : i32, i32
  }
  func.func @transform_5(%arg0: i32) -> (i32, i32) {
    %c0_i32 = arith.constant 0 : i32
    %c0_i32_0 = arith.constant 0 : i32
    %c0_i32_1 = arith.constant 0 : i32
    return %c0_i32, %c0_i32_0 : i32, i32
  }
  func.func @transform_6(%arg0: i32) -> (i32, i32) {
    %c0_i32 = arith.constant 0 : i32
    %c0_i32_0 = arith.constant 0 : i32
    %c0_i32_1 = arith.constant 0 : i32
    return %c0_i32, %c0_i32_0 : i32, i32
  }
  func.func @transform_7(%arg0: i32) -> (i32, i32) {
    %c0_i32 = arith.constant 0 : i32
    %c0_i32_0 = arith.constant 0 : i32
    %c0_i32_1 = arith.constant 0 : i32
    return %c0_i32, %c0_i32_0 : i32, i32
  }
  func.func @transform_8(%arg0: i32) -> (i32, i32) {
    %c0_i32 = arith.constant 0 : i32
    %c0_i32_0 = arith.constant 0 : i32
    %c0_i32_1 = arith.constant 0 : i32
    return %c0_i32, %c0_i32_0 : i32, i32
  }
  func.func @transform_9(%arg0: i32) -> (i32, i32) {
    %c0_i32 = arith.constant 0 : i32
    %c0_i32_0 = arith.constant 0 : i32
    %c0_i32_1 = arith.constant 0 : i32
    return %c0_i32, %c0_i32_0 : i32, i32
  }
  func.func @transform_10(%arg0: i32) -> (i32, i32) {
    %c0_i32 = arith.constant 0 : i32
    %c0_i32_0 = arith.constant 0 : i32
    %c0_i32_1 = arith.constant 0 : i32
    return %c0_i32, %c0_i32_0 : i32, i32
  }
  func.func @transform_11(%arg0: i32) -> (i32, i32) {
    %c0_i32 = arith.constant 0 : i32
    %c0_i32_0 = arith.constant 0 : i32
    %c0_i32_1 = arith.constant 0 : i32
    return %c0_i32, %c0_i32_0 : i32, i32
  }
  func.func @transform_12(%arg0: i32) -> (i32, i32) {
    %c0_i32 = arith.constant 0 : i32
    %c0_i32_0 = arith.constant 0 : i32
    return %c0_i32, %arg0 : i32, i32
  }
  func.func @transform_13(%arg0: i32) -> (i32, i32) {
    %c0_i32 = arith.constant 0 : i32
    %c0_i32_0 = arith.constant 0 : i32
    return %c0_i32, %arg0 : i32, i32
  }
  func.func @transform_14(%arg0: i32) -> (i32, i32) {
    %c0_i32 = arith.constant 0 : i32
    %c0_i32_0 = arith.constant 0 : i32
    return %c0_i32, %arg0 : i32, i32
  }
  func.func @transform_15(%arg0: i32) -> (i32, i32) {
    %c0_i32 = arith.constant 0 : i32
    %c0_i32_0 = arith.constant 0 : i32
    return %c0_i32, %arg0 : i32, i32
  }
  func.func @transform_16(%arg0: i32) -> (i32, i32) {
    %c0_i32 = arith.constant 0 : i32
    %c0_i32_0 = arith.constant 0 : i32
    return %c0_i32, %arg0 : i32, i32
  }
  func.func @transform_17(%arg0: i32) -> (i32, i32) {
    %c0_i32 = arith.constant 0 : i32
    %c0_i32_0 = arith.constant 0 : i32
    %c0_i32_1 = arith.constant 0 : i32
    return %c0_i32, %c0_i32_0 : i32, i32
  }
}

</mosaic_0001>

<bundles_post_ra>
// kernel: tpu_custom_call.1
= control target key start
LH: loop header
LB: loop body
LE: loop exit
PB: predicated region body
PF: predicated region fallthrough
CT: control target
= control target key end

     0   :  { %s4337_s0 = inlined_call_operand.vmem [shape: bf16[2,128], index: 0, kind: input, shape index: {}]   ;;  %s4338_s1 = inlined_call_operand.hbm [shape: f32[2,128], index: 1, kind: input, shape index: {}, may-alias: {1,17}]   ;;  %s4339_s2 = inlined_call_operand.vmem [shape: bf16[2,8,128], index: 2, kind: input, shape index: {}]   ;;  %s4340_s3 = inlined_call_operand.hbm [shape: bf16[128,128], index: 3, kind: input, shape index: {}]   ;;  %s4341_s4 = inlined_call_operand.hbm [shape: bf16[128,128], index: 4, kind: input, shape index: {}]   ;;  %s4342_s5 = inlined_call_operand.vmem [shape: f32[1,128], index: 5, kind: input, shape index: {}]   ;;  %s4343_s6 = inlined_call_operand.vmem [shape: f32[1,128], index: 6, kind: input, shape index: {}]   ;;  %s4344_s7 = inlined_call_operand.hbm [shape: bf16[128,384], index: 7, kind: input, shape index: {}]   ;;  %s4345_s8 = inlined_call_operand.hbm [shape: bf16[128,384], index: 8, kind: input, shape index: {}]   ;;  %s4346_s9 = inlined_call_operand.vmem [shape: f32[1,384], index: 9, kind: input, shape index: {}]   ;;  %s4347_s10 = inlined_call_operand.hbm [shape: bf16[128,384], index: 10, kind: input, shape index: {}]   ;;  %s4348_s11 = inlined_call_operand.vmem [shape: f32[1,384], index: 11, kind: input, shape index: {}]   ;;  %s4349_s12 = inlined_call_operand.hbm [shape: bf16[128,256], index: 12, kind: input, shape index: {}]   ;;  %s4350_s13 = inlined_call_operand.hbm [shape: bf16[128,256], index: 13, kind: input, shape index: {}]   ;;  %s4351_s14 = inlined_call_operand.hbm [shape: bf16[128,256], index: 14, kind: input, shape index: {}]   ;;  %s4352_s15 = inlined_call_operand.hbm [shape: f32[1,256], index: 15, kind: input, shape index: {}]   ;;  %s4353_s16 = inlined_call_operand.hbm [shape: f32[2,256], index: 16, kind: output, shape index: {0}]   ;;  %s4354_s17 = inlined_call_operand.hbm [shape: f32[2,128], index: 17, kind: output, shape index: {1}, may-alias: {1,17}]  }
   0x1   :  { %4389 = sst [smem:[#allocation39_spill]] %s4337_s0 }
   0x2   :  { %4390 = sst [smem:[#allocation40_spill]] %s4338_s1 }
   0x3   :  { %4391 = sst [smem:[#allocation41_spill]] %s4339_s2 }
   0x4   :  { %4392 = sst [smem:[#allocation42_spill]] %s4342_s5 }
   0x5   :  { %4393 = sst [smem:[#allocation43_spill]] %s4343_s6 }
   0x6   :  { %4394 = sst [smem:[#allocation44_spill]] %s4346_s9 }
   0x7   :  { %4395 = sst [smem:[#allocation45_spill]] %s4348_s11 }
   0x8   :  { %4396 = sst [smem:[#allocation46_spill]] %s4349_s12 }
   0x9   :  { %4397 = sst [smem:[#allocation47_spill]] %s4352_s15 }
   0xa   :  { %4398 = sst [smem:[#allocation48_spill]] %s4353_s16 }
   0xb   :  { %4399 = sst [smem:[#allocation49_spill]] %s4354_s17 }
   0xc   :  { %23 = vsyncpa [#allocation5], 0 }
   0xd   :  { %24 = vsyncpa [#allocation8], 0 }
   0xe   :  { %25 = vsyncpa [#allocation11], 0 }
   0xf   :  { %26 = vsyncpa [#allocation14], 0 }
  0x10   :  { %27 = vsyncpa [#allocation6], 0 }
  0x11   :  { %29 = vsyncpa [#allocation6 + $0x1], 0 }
  0x12   :  { %30 = vsyncpa [#allocation21], 0  ;;  %s3690_s24 = smov 0   ;;  %s3692_s25 = smov 0  }
  0x13   :  { %s3694_s26 = smov 0   ;;  %s3696_s27 = smov 0  }
  0x14 LB: > { %4400 = sst [smem:[#allocation29_spill]] %s3563_s24  ;;  %s3711_s28 = sadd.s32 4294967295, %s3575_s27   ;;  %s3575_s27 = sphi %s3696_s27, %s4472_s27   ;;  %s3571_s26 = sphi %s3694_s26, %s4475_s26   ;;  %s3567_s25 = sphi %s3692_s25, %s4474_s25   ;;  %s3563_s24 = sphi %s3690_s24, %s4473_s24  }
  0x15   : > { %4401 = sst [smem:[#allocation30_spill]] %s3567_s25  ;;  %s2477_s29 = sadd.s32 4294967294, %s3575_s27  }
  0x16   : > { %4402 = sst [smem:[#allocation31_spill]] %s3571_s26  ;;  %p308_p0 = scmp.ne.s32.totalorder %s3567_s25, %s3563_s24 }
  0x17   : > { %4403 = sst [smem:[#allocation32_spill]] %s3711_s28  ;;  %p4362_p1 = scmp.eq.s32.totalorder %s3711_s28, 0 }
  0x18   : > { %p416_p3 = scmp.eq.s32.totalorder %s2477_s29, 1  ;;  %p2478_p5 = scmp.ge.s32.totalorder %s3575_s27, 1 }
  0x19   : > { %p3720_p4 = por %p4362_p1, %p308_p0  ;;  %p444_p7 = scmp.lt.s32.totalorder %s3575_s27, 3 }
  0x1a   : > { %p3725_p6 = por %p416_p3, %p308_p0  ;;  %s3577_s19 = smov [#allocation4]  }
  0x1b   : > { %s4404_s0 = scalar_select %p3720_p4, 1, 0 }
  0x1c   : > { %s4406_s30 = scalar_select %p3725_p6, 1, 0 }
  0x1d   : > { %4405 = sst [smem:[#allocation33_spill]] %s4404_s0  ;;  %p3731_p9 = pnand %p2478_p5, %p444_p7 }
  0x1e   : > { %4407 = sst [smem:[#allocation34_spill]] %s4406_s30  ;;  %s460_s1 = sshll.u32 %s3577_s19, 4  ;;  %s461_s1 = int_to_ptr.vmem [resolvable:$true] %s460_s1 }
  0x1f   : > { %s4408_s18 = scalar_select %p3731_p9, 1, 0 }
  0x20   : > { %p2911_p11 = pneg %p3731_p9  ;;  %s3739_s20 = sadd.s32 1, %s3575_s27  }
  0x21   : > { %4409 = sst [smem:[#allocation35_spill]] %s4408_s18  ;;  %s292_s22 = ssub.s32 %s3575_s27, %s3739_s20 }
  0x22   : > { %4410 = sst [smem:[#allocation36_spill]] %s3739_s20  ;;  %p3743_p12 = pnand %p2911_p11, %p4362_p1 }
  0x23   : > { %p3749_p13 = scmp.eq.s32.totalorder %s292_s22, 0  ;;  %s295_s29 = sadd.s32 1, %s3571_s26 }
  0x24   : > { %s4411_s21 = scalar_select %p3743_p12, 1, 0 }
  0x25   : > { %s4412_s23 = scalar_select %p3749_p13, 1, 0 }
  0x26   : > { %s4413_s24 = sld [smem:[#allocation40_spill]]  ;;  %p3764_p5 = pneg %p3743_p12 }
  0x28   : > { %s4415_s6 = scalar_select %p3764_p5, 1, 0 }
  0x2c   : > { %s4414_s16 = smov %s4413_s24  ;;  %s3175_s17 = scalar_lea.hbm %s4413_s24, 32 }
  0x2d   : > { %p3176_p3 = scmp.ne.s32.totalorder %s4414_s16, %s3175_s17  ;;  %p3182_p10 = scmp.lt.u32.totalorder %s3175_s17, %s4414_s16 }
  0x2f   : > { %p3178_p7 = pnand %p3764_p5, %p3176_p3 }
  0x31   : > { %p3179_p11 = pneg %p3178_p7 }
  0x33   : > { %p3184_p8 = pnand %p3182_p10, %p3179_p11 }
  0x35   : > { %3187 = shalt.err (!%p3184_p8)
}
  0x36   : > { %s3188_s24 = scalar_lea.vmem %s461_s1, 32  ;;  %p3196_p6 = scmp.lt.s32.totalorder %s461_s1, %s461_s1 }
  0x37   : > { %p3189_p1 = scmp.ne.s32.totalorder %s461_s1, %s3188_s24  ;;  %p3197_p4 = scmp.lt.s32.totalorder %s3188_s24, %s3188_s24 }
  0x39   : > { %p3191_p2 = pnand %p3189_p1, %p3764_p5  ;;  %p3198_p9 = por %p3197_p4, %p3196_p6 }
  0x3b   : > { %p3192_p0 = pneg %p3191_p2 }
  0x3d   : > { %p3199_p13 = pnand %p3198_p9, %p3192_p0 }
  0x3f   : > { %3202 = shalt.err (!%p3199_p13)
}
  0x40   : > { %2914 = dma.hbm_to_vmem [thread:$0]  (!%p3743_p12), %s4414_s16, 32, %s461_s1, [#allocation5]  }
  0x41   : > { %p4416_p1 = scmp.ne.s32.totalorder %s4412_s23, 0  ;;  %p303_p2 = scmp.eq.s32.totalorder %s3575_s27, 0 }
  0x42   : > { %p4418_p4 = scmp.ne.s32.totalorder %s3571_s26, %s3567_s25  ;;  %p4419_p6 = scmp.eq.s32.totalorder %s3711_s28, 1 }
  0x43   : > { %s3783_s17 = scalar_select %p4416_p1, %s3571_s26, %s295_s29  }
  0x44   : > { %p3791_p8 = por %p4419_p6, %p4418_p4  ;;  %p4422_p9 = pmov %p4418_p4 }
  0x45   : > { %4417 = sst [smem:[#allocation37_spill]] %s3783_s17  ;;  %p2953_p13 = scmp.lt.s32.totalorder %s3575_s27, 2 }
  0x46   : > { %s4420_s30 = scalar_select %p3791_p8, 1, 0 }
  0x47   : > { %p304_p10 = por %p303_p2, %p4422_p9  ;;  %s551_s20 = sand.u32 1, %s3575_s27  }
  0x48   : > { %4421 = sst [smem:[#allocation38_spill]] %s4420_s30  ;;  %s4365_s19 = sand.u32 1, %s3571_s26  }
  0x49   : > { %s3803_s22 = sshll.u32 %s4365_s19, 6  ;;  %s3806_s1 = sshll.u32 %s3575_s27, 6 }
  0x4a   : > { %s4423_s12 = sld [smem:[#allocation46_spill]]  ;;  %s555_s9 = scalar_lea.vmem [#allocation15], %s3803_s22 }
  0x4b   : > { %s561_s11 = sshll.u32 %s555_s9, 4  ;;  %p3817_p0 = pnand %p2953_p13, %p304_p10  ;;  %s3815_s11 = int_to_ptr.vmem [resolvable:$true] %s561_s11 }
  0x4c   : > { %s3825_s23 = scalar_lea.hbm %s4350_s13, %s3806_s1  ;;  %s3827_s29 = scalar_lea.sflag [#allocation5], %s551_s20 }
  0x4d   : > { %s4424_s19 = scalar_select %p3817_p0, 1, 0 }
  0x4e   : > { %p3833_p7 = pneg %p3817_p0 }
  0x50   : > { %s3812_s24 = scalar_lea.hbm %s4423_s12, %s3806_s1  ;;  %s3208_s16 = scalar_lea.hbm %s4423_s12, 2048 }
  0x51   : > { %s3203_s30 = scalar_lea.hbm %s3812_s24, 1024  ;;  %p3209_p2 = scmp.lt.u32.totalorder %s3812_s24, %s4423_s12 }
  0x52   : > { %p3204_p3 = scmp.ne.s32.totalorder %s3812_s24, %s3203_s30  ;;  %p3210_p4 = scmp.lt.u32.totalorder %s3208_s16, %s3203_s30 }
  0x53   : > { %s4425_s5 = scalar_select %p3833_p7, 1, 0 }
  0x54   : > { %p3206_p11 = pnand %p3833_p7, %p3204_p3  ;;  %p3211_p6 = por %p3210_p4, %p3209_p2 }
  0x55   : > { %p3212_p9 = scmp.lt.u32.totalorder %s3203_s30, %s3812_s24 }
  0x56   : > { %p3207_p1 = pneg %p3206_p11 }
  0x57   : > { %p3213_p10 = por %p3212_p9, %p3211_p6 }
  0x59   : > { %p3214_p13 = pnand %p3213_p10, %p3207_p1 }
  0x5b   : > { %3217 = shalt.err (!%p3214_p13)
}
  0x5c   : > { %s3218_s20 = scalar_lea.vmem %s3815_s11, 1024  ;;  %s3578_s2 = smov [#allocation15]  }
  0x5d   : > { %p3219_p3 = scmp.ne.s32.totalorder %s3815_s11, %s3218_s20  ;;  %s3223_s9 = sshll.u32 %s3578_s2, 4  ;;  %s3224_s9 = int_to_ptr.vmem [resolvable:$false] %s3223_s9 }
  0x5e   : > { %s3225_s0 = scalar_lea.vmem %s3224_s9, 2048  ;;  %p3226_p12 = scmp.lt.s32.totalorder %s3815_s11, %s3224_s9 }
  0x5f   : > { %p3221_p11 = pnand %p3219_p3, %p3833_p7  ;;  %p3227_p5 = scmp.lt.s32.totalorder %s3225_s0, %s3218_s20 }
  0x61   : > { %p3222_p8 = pneg %p3221_p11  ;;  %p3228_p2 = por %p3227_p5, %p3226_p12 }
  0x63   : > { %p3229_p4 = pnand %p3228_p2, %p3222_p8 }
  0x65   : > { %3232 = shalt.err (!%p3229_p4)
}
  0x66   : > { %s3579_s30 = smov 128   ;;  %s3580_s16 = smov 64  }
  0x67   : > { %s3581_s17 = smov 4   ;;  %s575_s20 = scalar_lea.vmem [#allocation16], %s3803_s22 }
  0x68   : > { %2933 = dma.hbm_to_vmem [thread:$0]  (!%p3817_p0), %s3812_s24, 1024, %s3815_s11, %s3827_s29, %s3579_s30, %s3580_s16, %s3581_s17  }
  0x69   : > { %s581_s2 = sshll.u32 %s575_s20, 4  ;;  %s3582_s9 = smov [#allocation7]   ;;  %s3861_s2 = int_to_ptr.vmem [resolvable:$true] %s581_s2 }
  0x6a   : > { %s3863_s0 = sshll.u32 %s3582_s9, 4  ;;  %s3233_s12 = scalar_lea.hbm %s3825_s23, 1024  ;;  %s474_s0 = int_to_ptr.vmem [resolvable:$true] %s3863_s0 }
  0x6b   : > { %p3234_p12 = scmp.ne.s32.totalorder %s3825_s23, %s3233_s12  ;;  %s3238_s18 = scalar_lea.hbm %s4350_s13, 2048 }
  0x6c   : > { %p3239_p1 = scmp.lt.u32.totalorder %s3825_s23, %s4350_s13  ;;  %p3240_p6 = scmp.lt.u32.totalorder %s3238_s18, %s3233_s12 }
  0x6d   : > { %p3236_p5 = pnand %p3234_p12, %p3833_p7  ;;  %p3242_p10 = scmp.lt.u32.totalorder %s3233_s12, %s3825_s23 }
  0x6e   : > { %p3241_p9 = por %p3240_p6, %p3239_p1 }
  0x6f   : > { %p3237_p8 = pneg %p3236_p5 }
  0x70   : > { %p3243_p13 = por %p3242_p10, %p3241_p9 }
  0x72   : > { %p3244_p3 = pnand %p3243_p13, %p3237_p8 }
  0x74   : > { %3247 = shalt.err (!%p3244_p3)
}
  0x75   : > { %s3248_s24 = scalar_lea.vmem %s3861_s2, 1024  ;;  %s3583_s25 = smov [#allocation16]  }
  0x76   : > { %p3249_p11 = scmp.ne.s32.totalorder %s3861_s2, %s3248_s24  ;;  %s3253_s28 = sshll.u32 %s3583_s25, 4  ;;  %s3254_s28 = int_to_ptr.vmem [resolvable:$false] %s3253_s28 }
  0x77   : > { %s3255_s15 = scalar_lea.vmem %s3254_s28, 2048  ;;  %p3256_p12 = scmp.lt.s32.totalorder %s3861_s2, %s3254_s28 }
  0x78   : > { %p3251_p2 = pnand %p3249_p11, %p3833_p7  ;;  %p3257_p5 = scmp.lt.s32.totalorder %s3255_s15, %s3248_s24 }
  0x7a   : > { %p3252_p4 = pneg %p3251_p2  ;;  %p3258_p1 = por %p3257_p5, %p3256_p12 }
  0x7c   : > { %p3259_p6 = pnand %p3258_p1, %p3252_p4 }
  0x7e   : > { %3262 = shalt.err (!%p3259_p6)
}
  0x7f   : > { %2936 = dma.hbm_to_vmem [thread:$0]  (!%p3817_p0), %s3825_s23, 1024, %s3861_s2, %s3827_s29, %s3579_s30, %s3580_s16, %s3581_s17  }
  0x80   : > { %s3263_s18 = scalar_lea.hbm %s4340_s3, 1024  ;;  %p4426_p9 = scmp.ne.s32.totalorder %s4415_s6, 0 }
  0x81   : > { %p3264_p8 = scmp.ne.s32.totalorder %s4340_s3, %s3263_s18  ;;  %p3270_p3 = scmp.lt.u32.totalorder %s3263_s18, %s4340_s3 }
  0x83   : > { %p3266_p10 = pnand %p3264_p8, %p4426_p9 }
  0x85   : > { %p3267_p13 = pneg %p3266_p10 }
  0x87   : > { %p3272_p11 = pnand %p3270_p3, %p3267_p13 }
  0x89   : > { %3275 = shalt.err (!%p3272_p11)
}
  0x8a   : > { %s3276_s25 = scalar_lea.vmem %s474_s0, 1024  ;;  %p3284_p5 = scmp.lt.s32.totalorder %s474_s0, %s474_s0 }
  0x8b   : > { %p3277_p2 = scmp.ne.s32.totalorder %s474_s0, %s3276_s25  ;;  %p3285_p1 = scmp.lt.s32.totalorder %s3276_s25, %s3276_s25 }
  0x8d   : > { %p3279_p4 = pnand %p3277_p2, %p4426_p9  ;;  %p3286_p6 = por %p3285_p1, %p3284_p5 }
  0x8f   : > { %p3280_p12 = pneg %p3279_p4 }
  0x91   : > { %p3287_p0 = pnand %p3286_p6, %p3280_p12 }
  0x93   : > { %3290 = shalt.err (!%p3287_p0)
}
  0x94   : > { %p4427_p8 = scmp.ne.s32.totalorder %s4411_s21, 0  ;;  %s3584_s28 = smov [#allocation10]  }
  0x95   : > { %s505_s15 = sshll.u32 %s3584_s28, 4  ;;  %s3291_s18 = scalar_lea.hbm %s4344_s7, 3072  ;;  %s506_s15 = int_to_ptr.vmem [resolvable:$true] %s505_s15 }
  0x96   : > { %2917 = dma.hbm_to_vmem [thread:$0]  (!%p4427_p8), %s4340_s3, 1024, %s474_s0, [#allocation8], %s3580_s16, %s3580_s16, %s3581_s17  }
  0x97   : > { %p3292_p0 = scmp.ne.s32.totalorder %s4344_s7, %s3291_s18  ;;  %p3298_p3 = scmp.lt.u32.totalorder %s3291_s18, %s4344_s7 }
  0x99   : > { %p3294_p10 = pnand %p3292_p0, %p4426_p9 }
  0x9b   : > { %p3295_p13 = pneg %p3294_p10 }
  0x9d   : > { %p3300_p11 = pnand %p3298_p3, %p3295_p13 }
  0x9f   : > { %3303 = shalt.err (!%p3300_p11)
}
  0xa0   : > { %s3304_s0 = scalar_lea.vmem %s506_s15, 3072  ;;  %p3312_p5 = scmp.lt.s32.totalorder %s506_s15, %s506_s15 }
  0xa1   : > { %p3305_p2 = scmp.ne.s32.totalorder %s506_s15, %s3304_s0  ;;  %p3313_p1 = scmp.lt.s32.totalorder %s3304_s0, %s3304_s0 }
  0xa3   : > { %p3307_p4 = pnand %p3305_p2, %p4426_p9  ;;  %p3314_p6 = por %p3313_p1, %p3312_p5 }
  0xa5   : > { %p3308_p12 = pneg %p3307_p4 }
  0xa7   : > { %p3315_p7 = pnand %p3314_p6, %p3308_p12 }
  0xa9   : > { %3318 = shalt.err (!%p3315_p7)
}
  0xaa   : > { %s3585_s25 = smov 192   ;;  %s3586_s23 = smov 12  }
  0xab   : > { %2923 = dma.hbm_to_vmem [thread:$0]  (!%p4427_p8), %s4344_s7, 3072, %s506_s15, [#allocation11], %s3585_s25, %s3585_s25, %s3586_s23  }
  0xac   : > { %s3937_s18 = scalar_lea.hbm %s4351_s14, %s3806_s1  ;;  %s595_s11 = scalar_lea.vmem [#allocation17], %s3803_s22 }
  0xad   : > { %s601_s20 = sshll.u32 %s595_s11, 4  ;;  %s3587_s9 = smov [#allocation9]   ;;  %s3940_s20 = int_to_ptr.vmem [resolvable:$true] %s601_s20 }
  0xae   : > { %s3942_s24 = sshll.u32 %s3587_s9, 4  ;;  %s3319_s0 = scalar_lea.hbm %s3937_s18, 1024  ;;  %s487_s24 = int_to_ptr.vmem [resolvable:$true] %s3942_s24 }
  0xaf   : > { %p3320_p7 = scmp.ne.s32.totalorder %s3937_s18, %s3319_s0  ;;  %p4428_p0 = scmp.ne.s32.totalorder %s4425_s5, 0 }
  0xb0   : > { %s3324_s1 = scalar_lea.hbm %s4351_s14, 2048  ;;  %p3325_p3 = scmp.lt.u32.totalorder %s3937_s18, %s4351_s14 }
  0xb1   : > { %p3322_p10 = pnand %p3320_p7, %p4428_p0  ;;  %p3326_p11 = scmp.lt.u32.totalorder %s3324_s1, %s3319_s0 }
  0xb2   : > { %p3328_p4 = scmp.lt.u32.totalorder %s3319_s0, %s3937_s18 }
  0xb3   : > { %p3323_p13 = pneg %p3322_p10  ;;  %p3327_p2 = por %p3326_p11, %p3325_p3 }
  0xb5   : > { %p3329_p12 = por %p3328_p4, %p3327_p2 }
  0xb7   : > { %p3330_p5 = pnand %p3329_p12, %p3323_p13 }
  0xb9   : > { %3333 = shalt.err (!%p3330_p5)
}
  0xba   : > { %s3334_s22 = scalar_lea.vmem %s3940_s20, 1024  ;;  %s3588_s26 = smov [#allocation17]  }
  0xbb   : > { %p3335_p1 = scmp.ne.s32.totalorder %s3940_s20, %s3334_s22  ;;  %s3339_s11 = sshll.u32 %s3588_s26, 4  ;;  %s3340_s11 = int_to_ptr.vmem [resolvable:$false] %s3339_s11 }
  0xbc   : > { %s3341_s9 = scalar_lea.vmem %s3340_s11, 2048  ;;  %p3342_p10 = scmp.lt.s32.totalorder %s3940_s20, %s3340_s11 }
  0xbd   : > { %p3337_p6 = pnand %p3335_p1, %p4428_p0  ;;  %p3343_p8 = scmp.lt.s32.totalorder %s3341_s9, %s3334_s22 }
  0xbf   : > { %p3338_p7 = pneg %p3337_p6  ;;  %p3344_p3 = por %p3343_p8, %p3342_p10 }
  0xc1   : > { %p3345_p11 = pnand %p3344_p3, %p3338_p7 }
  0xc3   : > { %3348 = shalt.err (!%p3345_p11)
}
  0xc4   : > { %p4429_p13 = scmp.ne.s32.totalorder %s4424_s19, 0  ;;  %s3349_s2 = scalar_lea.hbm %s4341_s4, 1024 }
  0xc5   : > { %p3350_p8 = scmp.ne.s32.totalorder %s4341_s4, %s3349_s2  ;;  %p3356_p12 = scmp.lt.u32.totalorder %s3349_s2, %s4341_s4 }
  0xc6   : > { %2939 = dma.hbm_to_vmem [thread:$0]  (!%p4429_p13), %s3937_s18, 1024, %s3940_s20, %s3827_s29, %s3579_s30, %s3580_s16, %s3581_s17  }
  0xc7   : > { %p3352_p2 = pnand %p3350_p8, %p4426_p9 }
  0xc9   : > { %p3353_p4 = pneg %p3352_p2 }
  0xcb   : > { %p3358_p5 = pnand %p3356_p12, %p3353_p4 }
  0xcd   : > { %3361 = shalt.err (!%p3358_p5)
}
  0xce   : > { %s3362_s26 = scalar_lea.vmem %s487_s24, 1024  ;;  %p3370_p10 = scmp.lt.s32.totalorder %s487_s24, %s487_s24 }
  0xcf   : > { %p3363_p1 = scmp.ne.s32.totalorder %s487_s24, %s3362_s26  ;;  %p3371_p3 = scmp.lt.s32.totalorder %s3362_s26, %s3362_s26 }
  0xd1   : > { %p3365_p6 = pnand %p3363_p1, %p4426_p9  ;;  %p3372_p11 = por %p3371_p3, %p3370_p10 }
  0xd3   : > { %p3366_p7 = pneg %p3365_p6 }
  0xd5   : > { %p3373_p13 = pnand %p3372_p11, %p3366_p7 }
  0xd7   : > { %3376 = shalt.err (!%p3373_p13)
}
  0xd8   : > { %p4430_p8 = scmp.ne.s32.totalorder %s4411_s21, 0  ;;  %s3589_s20 = smov [#allocation12]  }
  0xd9   : > { %s518_s11 = sshll.u32 %s3589_s20, 4  ;;  %s3590_s9 = smov [#allocation13]   ;;  %s519_s11 = int_to_ptr.vmem [resolvable:$true] %s518_s11 }
  0xda   : > { %2920 = dma.hbm_to_vmem [thread:$0]  (!%p4430_p8), %s4341_s4, 1024, %s487_s24, [#allocation8], %s3580_s16, %s3580_s16, %s3581_s17  }
  0xdb   : > { %s534_s0 = sshll.u32 %s3590_s9, 4  ;;  %s3377_s1 = scalar_lea.hbm %s4345_s8, 3072  ;;  %s535_s0 = int_to_ptr.vmem [resolvable:$true] %s534_s0 }
  0xdc   : > { %p3378_p13 = scmp.ne.s32.totalorder %s4345_s8, %s3377_s1  ;;  %p3384_p12 = scmp.lt.u32.totalorder %s3377_s1, %s4345_s8 }
  0xde   : > { %p3380_p2 = pnand %p3378_p13, %p4426_p9 }
  0xe0   : > { %p3381_p4 = pneg %p3380_p2 }
  0xe2   : > { %p3386_p5 = pnand %p3384_p12, %p3381_p4 }
  0xe4   : > { %3389 = shalt.err (!%p3386_p5)
}
  0xe5   : > { %s3390_s16 = scalar_lea.vmem %s519_s11, 3072  ;;  %p3398_p10 = scmp.lt.s32.totalorder %s519_s11, %s519_s11 }
  0xe6   : > { %p3391_p1 = scmp.ne.s32.totalorder %s519_s11, %s3390_s16  ;;  %p3399_p3 = scmp.lt.s32.totalorder %s3390_s16, %s3390_s16 }
  0xe8   : > { %p3393_p6 = pnand %p3391_p1, %p4426_p9  ;;  %p3400_p11 = por %p3399_p3, %p3398_p10 }
  0xea   : > { %p3394_p7 = pneg %p3393_p6 }
  0xec   : > { %p3401_p0 = pnand %p3400_p11, %p3394_p7 }
  0xee   : > { %3404 = shalt.err (!%p3401_p0)
}
  0xef   : > { %2926 = dma.hbm_to_vmem [thread:$0]  (!%p4430_p8), %s4345_s8, 3072, %s519_s11, [#allocation11], %s3585_s25, %s3585_s25, %s3586_s23  }
  0xf0   : > { %s3405_s20 = scalar_lea.hbm %s4347_s10, 3072 }
  0xf1   : > { %p3406_p13 = scmp.ne.s32.totalorder %s4347_s10, %s3405_s20  ;;  %p3412_p4 = scmp.lt.u32.totalorder %s3405_s20, %s4347_s10 }
  0xf3   : > { %p3408_p0 = pnand %p3406_p13, %p4426_p9 }
  0xf5   : > { %p3409_p2 = pneg %p3408_p0 }
  0xf7   : > { %p3414_p12 = pnand %p3412_p4, %p3409_p2 }
  0xf9   : > { %3417 = shalt.err (!%p3414_p12)
}
  0xfa   : > { %s3418_s28 = scalar_lea.vmem %s535_s0, 3072  ;;  %p3426_p7 = scmp.lt.s32.totalorder %s535_s0, %s535_s0 }
  0xfb   : > { %p3419_p5 = scmp.ne.s32.totalorder %s535_s0, %s3418_s28  ;;  %p3427_p10 = scmp.lt.s32.totalorder %s3418_s28, %s3418_s28 }
  0xfd   : > { %p3421_p1 = pnand %p3419_p5, %p4426_p9  ;;  %p3428_p3 = por %p3427_p10, %p3426_p7 }
  0xff   : > { %p3422_p6 = pneg %p3421_p1 }
 0x101   : > { %p3429_p11 = pnand %p3428_p3, %p3422_p6 }
 0x103   : > { %3432 = shalt.err (!%p3429_p11)
}
 0x104   : > { %s4431_s22 = sld [smem:[#allocation31_spill]]  ;;  %s2492_s6 = sshll.u32 %s3575_s27, 4 }
 0x105   : > { %2929 = dma.hbm_to_vmem [thread:$0]  (!%p4430_p8), %s4347_s10, 3072, %s535_s0, [#allocation14], %s3585_s25, %s3585_s25, %s3586_s23  }
 0x106   : > { %s4433_s18 = sld [smem:[#allocation47_spill]]  ;;  %p4434_p13 = scmp.ne.s32.totalorder %s4425_s5, 0 }
 0x10a   : > { %s4432_s26 = sand.u32 1, %s4431_s22  }
 0x10b   : > { %s614_s16 = scalar_lea.vmem [#allocation18], %s4432_s26 }
 0x10c   : > { %s621_s17 = sshll.u32 %s614_s16, 4  ;;  %s619_s20 = scalar_lea.hbm %s4433_s18, %s2492_s6  ;;  %s622_s17 = int_to_ptr.vmem [resolvable:$true] %s621_s17 }
 0x10d   : > { %s3433_s21 = scalar_lea.hbm %s619_s20, 16  ;;  %s3438_s2 = scalar_lea.hbm %s4433_s18, 32 }
 0x10e   : > { %p3434_p9 = scmp.ne.s32.totalorder %s619_s20, %s3433_s21  ;;  %p3439_p8 = scmp.lt.u32.totalorder %s619_s20, %s4433_s18 }
 0x10f   : > { %p3440_p4 = scmp.lt.u32.totalorder %s3438_s2, %s3433_s21  ;;  %p3442_p5 = scmp.lt.u32.totalorder %s3433_s21, %s619_s20 }
 0x110   : > { %p3436_p0 = pnand %p3434_p9, %p4434_p13 }
 0x111   : > { %p3441_p12 = por %p3440_p4, %p3439_p8 }
 0x112   : > { %p3437_p2 = pneg %p3436_p0 }
 0x113   : > { %p3443_p1 = por %p3442_p5, %p3441_p12 }
 0x115   : > { %p3444_p6 = pnand %p3443_p1, %p3437_p2 }
 0x117   : > { %3447 = shalt.err (!%p3444_p6)
}
 0x118   : > { %s3448_s23 = scalar_lea.vmem %s622_s17, 16  ;;  %s3591_s0 = smov [#allocation18]  }
 0x119   : > { %p3449_p7 = scmp.ne.s32.totalorder %s622_s17, %s3448_s23  ;;  %s3453_s28 = sshll.u32 %s3591_s0, 4  ;;  %s3454_s28 = int_to_ptr.vmem [resolvable:$false] %s3453_s28 }
 0x11a   : > { %s3455_s11 = scalar_lea.vmem %s3454_s28, 32  ;;  %p3456_p11 = scmp.lt.s32.totalorder %s622_s17, %s3454_s28 }
 0x11b   : > { %p3451_p10 = pnand %p3449_p7, %p4434_p13  ;;  %p3457_p9 = scmp.lt.s32.totalorder %s3455_s11, %s3448_s23 }
 0x11d   : > { %p3452_p3 = pneg %p3451_p10  ;;  %p3458_p0 = por %p3457_p9, %p3456_p11 }
 0x11f   : > { %p3459_p4 = pnand %p3458_p0, %p3452_p3 }
 0x121   : > { %3462 = shalt.err (!%p3459_p4)
}
 0x122   : > { %p4435_p8 = scmp.ne.s32.totalorder %s4424_s19, 0  ;;  %s4436_s12 = sld [smem:[#allocation35_spill]] }
 0x124   : > { %2942 = dma.hbm_to_vmem [thread:$0]  (!%p4435_p8), %s619_s20, 16, %s622_s17, %s3827_s29  }
 0x128   : > { %p4437_p2 = scmp.ne.s32.totalorder %s4436_s12, 0 }
 0x129   : > { %s4438_s22 = sld [smem:[#allocation32_spill]] (!%p4437_p2) }
 0x12a   : > { %630 = sbr.rel (%p4437_p2) target bundleno = 1973 (0x7b5), region = 84 }
 0x12f   : > { %p4439_p12 = scmp.eq.s32.totalorder (!%p4437_p2), %s4438_s22, 0 }
 0x131   : > { %3534 = dma.done.wait (%p4439_p12), [#allocation5], 32   ;;  %p4440_p13 = pmov %p4439_p12 }
 0x132   : > { %p4441_p5 = pmov %p4439_p12 }
 0x133   : > { %3536 = vsyncadd (%p4440_p13), [#allocation5], 4294967264 }
 0x134   : > { %3538 = dma.done.wait (%p4441_p5), [#allocation8], 2048   ;;  %p4442_p1 = pmov %p4441_p5 }
 0x136   : > { %3540 = vsyncadd (%p4442_p1), [#allocation8], 4294965248  ;;  %p4443_p6 = pmov %p4442_p1 }
 0x137   : > { %p4444_p7 = pmov %p4442_p1 }
 0x138   : > { %3542 = dma.done.wait (%p4443_p6), [#allocation11], 6144  }
 0x139   : > { %3544 = vsyncadd (%p4444_p7), [#allocation11], 4294961152  ;;  %p4445_p10 = pmov %p4442_p1 }
 0x13a   : > { %p4446_p3 = pmov %p4442_p1 }
 0x13b   : > { %3546 = dma.done.wait (%p4445_p10), [#allocation14], 3072  }
 0x13c   : > { %3548 = vsyncadd (%p4446_p3), [#allocation14], 4294964224  ;;  %s4447_s5 = sld [smem:[#allocation30_spill]]  ;;  %s4448_s19 = sld [smem:[#allocation33_spill]] }
 0x13d   : > { %s656_s29 = sand.u32 1, %s4438_s22  }
 0x13e   : > { %s657_s16 = scalar_lea.sflag [#allocation5], %s656_s29 }
 0x142   : > { %s4072_s6 = sand.u32 1, %s4447_s5   ;;  %p4449_p11 = scmp.ne.s32.totalorder %s4448_s19, 0 }
 0x143   : > { %s2500_s26 = sshll.u32 %s4072_s6, 6 }
 0x144   : > { %s4075_s17 = scalar_lea.vmem [#allocation15], %s2500_s26 }
 0x145   : > { %3550 = dma.done.wait (%p4449_p11), %s657_s16, 3088  }
 0x146   : > { %3552 = vsyncadd (%p4449_p11), %s657_s16, 4294964208  ;;  %s2503_s24 = sshll.u32 %s4072_s6, 1  ;;  %s4082_s30 = scalar_lea.vmem [#allocation16], %s2500_s26 }
 0x147   : > { %s4084_s20 = scalar_lea.vmem [#allocation17], %s2500_s26  ;;  %s686_s21 = scalar_lea.vmem [#allocation18], %s4072_s6 }
 0x148   : > { %s4087_s9 = scalar_lea.vmem [#allocation19], %s2503_s24  ;;  %p4450_p9 = scmp.ne.s32.totalorder %s4438_s22, 0 }
 0x149   : > { %v3015_v0 = vld [vmem:[#allocation7] sm:$0xff] (!%p4450_p9)   ;;  %v3592_v1 = vmov (!%p4450_p9), 0.0   ;;  %v3017_v3 = vld [vmem:[#allocation7 + $0x8] sm:$0xff] (!%p4450_p9)   ;;  %vm3593_vm0 = vmmov (!%p4450_p9), 0   ;;  %v3019_v5 = vld [vmem:[#allocation7 + $0x10] sm:$0xff] (!%p4450_p9)   ;;  %s4451_s1 = sld [smem:[#allocation41_spill]] (!%p4450_p9)  ;;  %v980_v22 = vlaneseq (!%p4450_p9) }
 0x14a   : > { %755 = sbr.rel (%p4450_p9) target bundleno = 1673 (0x689), region = 128  ;;  %2701 = vmatprep.subr.bf16.mxu0 (!%p4450_p9), %v3592_v1  ;;  %2721 = vmatprep.subr.bf16.mxu1 (!%p4450_p9), %v3592_v1  ;;  %v3016_v2 = vld [vmem:[#allocation9] sm:$0xff] (!%p4450_p9)   ;;  %v3018_v4 = vld [vmem:[#allocation9 + $0x8] sm:$0xff] (!%p4450_p9)   ;;  %v3020_v6 = vld [vmem:[#allocation9 + $0x10] sm:$0xff] (!%p4450_p9)   ;;  %v3594_v20 = vmov (!%p4450_p9), 1966171168  }
 0x14b   : > { %2702 = vmatpush3.bf16.msra.mxu0 (!%p4450_p9), %v3015_v0  ;;  %2717 = vmatprep.mubr.msk.bf16.mxu0 (!%p4450_p9), %vm3593_vm0, %v3592_v1  ;;  %v3021_v7 = vld [vmem:[#allocation7 + $0x18] sm:$0xff] (!%p4450_p9)   ;;  %v3023_v9 = vld [vmem:[#allocation7 + $0x20] sm:$0xff] (!%p4450_p9)   ;;  %v3025_v11 = vld [vmem:[#allocation7 + $0x28] sm:$0xff] (!%p4450_p9)   ;;  %v978_v21 = vunpack.c.l.s4 (!%p4450_p9), %v3594_v20  ;;  %v4127_v24 = vshrl.u32 (!%p4450_p9), %v980_v22, 7  ;;  %s4452_s0 = sld [smem:[#allocation42_spill]] (!%p4450_p9)  ;;  %s4453_s12 = sld [smem:[#allocation43_spill]] (!%p4450_p9) }
 0x14c   : > { %2703 = vmatprep.subr.bf16.mxu0 (!%p4450_p9), %v3592_v1  ;;  %2722 = vmatpush3.bf16.msra.mxu1 (!%p4450_p9), %v3016_v2  ;;  %v3022_v8 = vld [vmem:[#allocation9 + $0x18] sm:$0xff] (!%p4450_p9)   ;;  %v3024_v10 = vld [vmem:[#allocation9 + $0x20] sm:$0xff] (!%p4450_p9)   ;;  %v3026_v12 = vld [vmem:[#allocation9 + $0x28] sm:$0xff] (!%p4450_p9)   ;;  %v1038_v51 = vand.u32 (!%p4450_p9), 127, %v980_v22  ;;  %vm1047_vm1 = vcmask (!%p4450_p9), 1041409   ;;  %vm1050_vm2 = vcmask (!%p4450_p9), 58368  }
 0x14d   : > { %2723 = vmatprep.subr.bf16.mxu1 (!%p4450_p9), %v3592_v1  ;;  %2737 = vmatprep.mubr.msk.bf16.mxu1 (!%p4450_p9), %vm3593_vm0, %v3592_v1  ;;  %v3027_v13 = vld [vmem:[#allocation7 + $0x30] sm:$0xff] (!%p4450_p9)   ;;  %v3029_v15 = vld [vmem:[#allocation7 + $0x38] sm:$0xff] (!%p4450_p9)   ;;  %v979_v23 = vunpack.c.0.s8 (!%p4450_p9), %v978_v21  ;;  %v4131_v30 = vsub.s32 (!%p4450_p9), 0, %v4127_v24  ;;  %v3595_v59 = vmov (!%p4450_p9), 0   ;;  %v4148_v60 = vsub.s32 (!%p4450_p9), 1, %v4127_v24  ;;  %s4454_s19 = sld [smem:[#allocation39_spill]] (!%p4450_p9) }
 0x14e   : > { %v3028_v14 = vld [vmem:[#allocation9 + $0x30] sm:$0xff] (!%p4450_p9)   ;;  %v4109_v16 = vld [vmem:[#allocation4] sm:$0x3] (!%p4450_p9)  ;;  %v1041_v53 = vsub.s32 (!%p4450_p9), %v1038_v51, %v4127_v24  ;;  %3014 = vset.pattern.permute.xlu0 (!%p4450_p9), %v3595_v59  ;;  %3013 = vset.pattern.permute.xlu1 (!%p4450_p9), %v3595_v59  ;;  %v3039_v20 = vld [vmem:[#allocation12 + $0x20] ss:$12 sps:$4 sm:$0xff] (!%p4450_p9)   ;;  %s4455_s16 = sld [smem:[#allocation45_spill]] (!%p4450_p9) }
 0x14f   : > { %2704 = vmatpush3.bf16.msra.mxu0 (!%p4450_p9), %v3017_v3  ;;  %v3030_v17 = vld [vmem:[#allocation9 + $0x38] sm:$0xff] (!%p4450_p9)   ;;  %v4120_v19 = vpack.c.bf16 (!%p4450_p9), %v4109_v16, %v4109_v16  ;;  %v982_v25 = vsub.s32 (!%p4450_p9), %v979_v23, %v4127_v24  ;;  %s4456_s2 = sld [smem:[#allocation44_spill]] (!%p4450_p9) }
 0x150   : > { %2705 = vmatprep.subr.bf16.mxu0 (!%p4450_p9), %v3592_v1  ;;  %2724 = vmatpush3.bf16.msra.mxu1 (!%p4450_p9), %v3018_v4  ;;  %v4114_v18 = vld [vmem:[%s4451_s1] sm:$0xff] (!%p4450_p9)  }
 0x151   : > { %2725 = vmatprep.subr.bf16.mxu1 %v3592_v1  ;;  %v2522_v40 = vld [vmem:[%s4452_s0] ss:$0 sm:$0xff] }
 0x152   : > { %v2523_v46 = vld [vmem:[%s4453_s12] ss:$0 sm:$0xff] }
 0x153   : > { %2706 = vmatpush3.bf16.msra.mxu0 %v3019_v5  ;;  %v3036_v21 = vld [vmem:[#allocation12 + $0x18] ss:$12 sps:$4 sm:$0xff]  }
 0x154   : > { %2707 = vmatprep.subr.bf16.mxu0 %v3592_v1  ;;  %2726 = vmatpush3.bf16.msra.mxu1 %v3020_v6 }
 0x155   : > { %2727 = vmatprep.subr.bf16.mxu1 %v3592_v1 }
 0x157   : > { %2708 = vmatpush3.bf16.msra.mxu0 %v3021_v7 }
 0x158   : > { %2709 = vmatprep.subr.bf16.mxu0 %v3592_v1  ;;  %2728 = vmatpush3.bf16.msra.mxu1 %v3022_v8 }
 0x159   : > { %2729 = vmatprep.subr.bf16.mxu1 %v3592_v1 }
 0x15b   : > { %2710 = vmatpush3.bf16.msra.mxu0 %v3023_v9 }
 0x15c   : > { %2711 = vmatprep.subr.bf16.mxu0 %v3592_v1  ;;  %2730 = vmatpush3.bf16.msra.mxu1 %v3024_v10 }
 0x15d   : > { %2731 = vmatprep.subr.bf16.mxu1 %v3592_v1 }
 0x15f   : > { %2712 = vmatpush3.bf16.msra.mxu0 %v3025_v11 }
 0x160   : > { %2713 = vmatprep.subr.bf16.mxu0 %v3592_v1  ;;  %2732 = vmatpush3.bf16.msra.mxu1 %v3026_v12 }
 0x161   : > { %2733 = vmatprep.subr.bf16.mxu1 %v3592_v1 }
 0x163   : > { %2714 = vmatpush3.bf16.msra.mxu0 %v3027_v13  ;;  %v3032_v13 = vld [vmem:[#allocation12] ss:$12 sps:$4 sm:$0xff]  }
 0x164   : > { %2715 = vmatprep.subr.bf16.mxu0 %v3592_v1  ;;  %2734 = vmatpush3.bf16.msra.mxu1 %v3028_v14  ;;  %v3034_v14 = vld [vmem:[#allocation12 + $0x4] ss:$12 sps:$4 sm:$0xff]  }
 0x165   : > { %2735 = vmatprep.subr.bf16.mxu1 %v3592_v1 }
 0x167   : > { %2716 = vmatpush3.bf16.msra.mxu0 %v3029_v15  ;;  %v3035_v15 = vld [vmem:[#allocation12 + $0x8] ss:$12 sps:$4 sm:$0xff]  }
 0x168   : > { %2736 = vmatpush3.bf16.msra.mxu1 %v3030_v17  ;;  %v3038_v17 = vld [vmem:[#allocation12 + $0x1c] ss:$12 sps:$4 sm:$0xff]   ;;  %1334 = vmatprep.subr.bf16.mxu0 %v3034_v14 }
 0x169   : > { %2741 = vmatprep.subr.bf16.mxu1 %v3592_v1 }
 0x16a   : > { %2718 = vmatmul.mubr.bf16.vlgmr.msra.gmra.mrb[0].mxu0 %v4120_v19 }
 0x16b   : > { %2738 = vmatmul.mubr.bf16.vlgmr.msra.gmra.mrb[0].mxu1 %v4114_v18  ;;  %1366 = vmatprep.mubr.bf16.mxu0 %v3595_v59 }
 0x16c   : > { %2757 = vmatprep.mubr.msk.bf16.mxu1 %vm3593_vm0, %v3592_v1  ;;  %2742 = vmatpush3.bf16.msra.mxu1 %v3035_v15  ;;  %v3070_v15 = vld [vmem:[#allocation10 + $0x1c] ss:$12 sps:$4 sm:$0xff]  }
 0x16d   : > { %1335 = vmatpush1.bf16.msra.mxu0 %v3032_v13  ;;  %2743 = vmatprep.subr.bf16.mxu1 %v3592_v1  ;;  %v3067_v13 = vld [vmem:[#allocation10 + $0x8] ss:$12 sps:$4 sm:$0xff]  }
 0x16e   : > { %1336 = vmatprep.subr.bf16.mxu0 %v3038_v17  ;;  %v3068_v17 = vld [vmem:[#allocation10 + $0x18] ss:$12 sps:$4 sm:$0xff]  }
 0x170   : > { %2744 = vmatpush3.bf16.msra.mxu1 %v3039_v20  ;;  %v3071_v20 = vld [vmem:[#allocation10 + $0x20] ss:$12 sps:$4 sm:$0xff]  }
 0x171   : > { %1337 = vmatpush1.bf16.msra.mxu0 %v3036_v21  ;;  %2745 = vmatprep.subr.bf16.mxu1 %v3592_v1  ;;  %v3074_v21 = vld [vmem:[#allocation10 + $0x34] ss:$12 sps:$4 sm:$0xff]  }
 0x23d   : > { %v859_v26 = vpop.f32.mrb[0].mxu0 }
 0x23e   : > { %v983_v27 = vrot.slane %v859_v26, %v982_v25  ;;  %v2719_v28 = vpop.f32.mrb[1].mxu0  ;;  %v969_v29 = vpop.f32.mrb[0].mxu1 }
 0x23f   : > { %v862_v31 = vpop.f32.mrb[2].mxu0  ;;  %v2739_v32 = vpop.f32.mrb[1].mxu1 }
 0x240   : > { %v984_v33 = vcombine.high %v983_v27, %v983_v27  ;;  %v991_v34 = vrot.slane %v983_v27, %v982_v25  ;;  %v2720_v35 = vpop.f32.mrb[3].mxu0  ;;  %v972_v36 = vpop.f32.mrb[2].mxu1  ;;  %v3040_v31 = vld [vmem:[#allocation12 + $0x30] ss:$12 sps:$4 sm:$0xff]   ;;  %v3043_v32 = vld [vmem:[#allocation12 + $0x38] ss:$12 sps:$4 sm:$0xff]  }
 0x241   : > { %v2740_v37 = vpop.f32.mrb[3].mxu1  ;;  %2746 = vmatpush3.bf16.msra.mxu1 %v3043_v32  ;;  %v3044_v35 = vld [vmem:[#allocation12 + $0x48] ss:$12 sps:$4 sm:$0xff]  }
 0x242   : > { %v1002_v38 = vrot.slane %v991_v34, %v4131_v30  ;;  %v998_v39 = vrot.slane %v984_v33, %v982_v25  ;;  %v3046_v34 = vld [vmem:[#allocation12 + $0x4c] ss:$12 sps:$4 sm:$0xff]   ;;  %2747 = vmatprep.subr.bf16.mxu1 %v3592_v1  ;;  %v3050_v37 = vld [vmem:[#allocation12 + $0x64] ss:$12 sps:$4 sm:$0xff]   ;;  %v3086_v32 = vld [vmem:[#allocation10 + $0x7c] ss:$12 sps:$4 sm:$0xff]  }
 0x244   : > { %v1009_v41 = vadd.f32 %v1002_v38, %v969_v29  ;;  %v1006_v42 = vrot.slane %v998_v39, %v4131_v30  ;;  %v3042_v29 = vld [vmem:[#allocation12 + $0x34] ss:$12 sps:$4 sm:$0xff]  }
 0x245   : > { %1338 = vmatprep.subr.bf16.mxu0 %v3042_v29  ;;  %v3048_v38 = vld [vmem:[#allocation12 + $0x60] ss:$12 sps:$4 sm:$0xff]   ;;  %v3051_v39 = vld [vmem:[#allocation12 + $0x68] ss:$12 sps:$4 sm:$0xff]  }
 0x246   : > { %v1018_v43 = vadd.f32 %v2522_v40, %v1009_v41  ;;  %v1010_v44 = vadd.f32 %v1006_v42, %v972_v36  ;;  %1339 = vmatpush1.bf16.msra.mxu0 %v3040_v31  ;;  %v3047_v36 = vld [vmem:[#allocation12 + $0x50] ss:$12 sps:$4 sm:$0xff]   ;;  %v3052_v41 = vld [vmem:[#allocation12 + $0x78] ss:$12 sps:$4 sm:$0xff]   ;;  %v3055_v42 = vld [vmem:[#allocation12 + $0x80] ss:$12 sps:$4 sm:$0xff]  }
 0x247   : > { %1340 = vmatprep.subr.bf16.mxu0 %v3046_v34  ;;  %2748 = vmatpush3.bf16.msra.mxu1 %v3047_v36  ;;  %v3080_v29 = vld [vmem:[#allocation10 + $0x60] ss:$12 sps:$4 sm:$0xff]   ;;  %v3083_v31 = vld [vmem:[#allocation10 + $0x68] ss:$12 sps:$4 sm:$0xff]   ;;  %v3088_v36 = vld [vmem:[#allocation10 + $0x90] ss:$12 sps:$4 sm:$0xff]  }
 0x248   : > { %3129 = vtanh.f32 %v1018_v43  ;;  %v1019_v45 = vadd.f32 %v2522_v40, %v1010_v44  ;;  %2749 = vmatprep.subr.bf16.mxu1 %v3592_v1  ;;  %v3054_v40 = vld [vmem:[#allocation12 + $0x7c] ss:$12 sps:$4 sm:$0xff]   ;;  %v3058_v43 = vld [vmem:[#allocation12 + $0x94] ss:$12 sps:$4 sm:$0xff]  }
 0x249   : > { %v3056_v44 = vld [vmem:[#allocation12 + $0x90] ss:$12 sps:$4 sm:$0xff]   ;;  %v3087_v34 = vld [vmem:[#allocation10 + $0x80] ss:$12 sps:$4 sm:$0xff]  }
 0x24a   : > { %3131 = vtanh.f32 %v1019_v45  ;;  %1341 = vmatpush1.bf16.msra.mxu0 %v3044_v35  ;;  %v3059_v45 = vld [vmem:[#allocation12 + $0x98] ss:$12 sps:$4 sm:$0xff]   ;;  %v3090_v35 = vld [vmem:[#allocation10 + $0x94] ss:$12 sps:$4 sm:$0xff]  }
 0x24b   : > { %1342 = vmatprep.subr.bf16.mxu0 %v3050_v37  ;;  %2750 = vmatpush3.bf16.msra.mxu1 %v3051_v39  ;;  %v3091_v37 = vld [vmem:[#allocation10 + $0x98] ss:$12 sps:$4 sm:$0xff]   ;;  %v3092_v39 = vld [vmem:[#allocation10 + $0xa8] ss:$12 sps:$4 sm:$0xff]  }
 0x24c   : > { %2751 = vmatprep.subr.bf16.mxu1 %v3592_v1 }
 0x24e   : > { %1343 = vmatpush1.bf16.msra.mxu0 %v3048_v38  ;;  %v3094_v38 = vld [vmem:[#allocation10 + $0xac] ss:$12 sps:$4 sm:$0xff]  }
 0x24f   : > { %1344 = vmatprep.subr.bf16.mxu0 %v3054_v40  ;;  %2752 = vmatpush3.bf16.msra.mxu1 %v3055_v42  ;;  %v3095_v40 = vld [vmem:[#allocation10 + $0xb0] ss:$12 sps:$4 sm:$0xff]   ;;  %v756_v42 = vld [vmem:[%s4454_s19] sm:$0x1] }
 0x250   : > { %2753 = vmatprep.subr.bf16.mxu1 %v3592_v1 }
 0x252   : > { %v3130_v47 = vpop.eup %3129  ;;  %1345 = vmatpush1.bf16.msra.mxu0 %v3052_v41  ;;  %v3098_v41 = vld [vmem:[#allocation13 + $0x4] ss:$12 sps:$4 sm:$0xff]  }
 0x253   : > { %v1029_v48 = vmul.f32 %v3130_v47, %v2523_v46  ;;  %1346 = vmatprep.subr.bf16.mxu0 %v3058_v43  ;;  %2754 = vmatpush3.bf16.msra.mxu1 %v3059_v45  ;;  %v3060_v47 = vld [vmem:[#allocation12 + $0xa8] ss:$12 sps:$4 sm:$0xff]   ;;  %v3096_v43 = vld [vmem:[#allocation13] ss:$12 sps:$4 sm:$0xff]  }
 0x254   : > { %v3132_v49 = vpop.eup %3131  ;;  %2755 = vmatprep.subr.bf16.mxu1 %v3592_v1  ;;  %v3101_v45 = vld [vmem:[#allocation13 + $0x1c] ss:$12 sps:$4 sm:$0xff]  }
 0x255   : > { %1031 = vadd.xlane.f32.xlu0 %v1029_v48  ;;  %v1030_v50 = vmul.f32 %v3132_v49, %v2523_v46  ;;  %v3062_v46 = vld [vmem:[#allocation12 + $0xac] ss:$12 sps:$4 sm:$0xff]   ;;  %v3063_v48 = vld [vmem:[#allocation12 + $0xb0] ss:$12 sps:$4 sm:$0xff]  }
 0x256   : > { %1347 = vmatpush1.bf16.msra.mxu0 %v3056_v44  ;;  %v3066_v49 = vld [vmem:[#allocation10 + $0x4] ss:$12 sps:$4 sm:$0xff]   ;;  %v3117_v44 = vld [vmem:[#allocation13 + $0x8] ss:$12 sps:$4 sm:$0xff]  }
 0x257   : > { %1348 = vmatprep.subr.bf16.mxu0 %v3062_v46  ;;  %2756 = vmatpush3.bf16.msra.mxu1 %v3063_v48  ;;  %v3099_v46 = vld [vmem:[#allocation13 + $0x18] ss:$12 sps:$4 sm:$0xff]   ;;  %v3104_v48 = vld [vmem:[#allocation13 + $0x34] ss:$12 sps:$4 sm:$0xff]  }
 0x258   : > { %2761 = vmatprep.subr.bf16.mxu1 %v3592_v1 }
 0x259   : > { %1033 = vadd.xlane.f32.xlu0 %v1030_v50  ;;  %v1107_v50 = vunpack.c.l.bf16 %v4114_v18 }
 0x25a   : > { %1349 = vmatpush1.bf16.msra.mxu0 %v3060_v47  ;;  %v3121_v47 = vld [vmem:[#allocation13 + $0x20] ss:$12 sps:$4 sm:$0xff]  }
 0x25b   : > { %1543 = vmatprep.subr.bf16.mxu0 %v3066_v49  ;;  %v3102_v49 = vld [vmem:[#allocation13 + $0x30] ss:$12 sps:$4 sm:$0xff]  }
 0x2e2   : > { %v1032_v52 = vpop.xlane.xlu0 %1031 }
 0x2e3   : > { %v1042_v55 = vrot.slane %v1032_v52, %v1041_v53 }
 0x2e6   : > { %v1034_v54 = vpop.xlane.xlu0 %1033 }
 0x2e7   : > { %v1046_v56 = vrot.slane %v1034_v54, %v1041_v53 }
 0x2e9   : > { %v1048_v57 = vsel %vm1047_vm1, %v1046_v56, %v1042_v55 }
 0x2ea   : > { %v1051_v58 = vsel %vm1050_vm2, %v1048_v57, -inf }
 0x2eb   : > { %1052 = vmax.xlane.f32.xlu1 %v1051_v58 }
 0x378   : > { %v1053_v61 = vpop.xlane.xlu1 %1052 }
 0x379   : > { %v1058_v62 = vrot.slane %v1053_v61, %v4131_v30  ;;  %v1062_v63 = vrot.slane %v1053_v61, %v4148_v60 }
 0x37b   : > { %v1065_v0 = vsub.f32 %v1032_v52, %v1058_v62  ;;  %v1066_v2 = vsub.f32 %v1034_v54, %v1062_v63 }
 0x37d   : > { %v1067_v3 = vmul.f32 1.442695, %v1065_v0  ;;  %v1069_v4 = vmul.f32 1.442695, %v1066_v2 }
 0x37f   : > { %3133 = vpow2.f32 %v1067_v3 }
 0x380   : > { %3135 = vpow2.f32 %v1069_v4 }
 0x389   : > { %v3134_v5 = vpop.eup %3133 }
 0x38a   : > { %v3136_v6 = vpop.eup %3135  ;;  %1074 = vperm.xlu1 %3013, %v3134_v5  }
 0x38b   : > { %1077 = vperm.xlu0 %3014, %v3136_v6  }
 0x409   : > { %v1075_v7 = vpop.permute.xlu1 %1074 }
 0x40a   : > { %v1078_v8 = vpop.permute.xlu0 %1077  ;;  %v1082_v9 = vrot.slane %v1075_v7, %v1041_v53 }
 0x40b   : > { %v1086_v10 = vrot.slane %v1078_v8, %v1041_v53  ;;  %v1108_v53 = vunpack.c.h.bf16 %v4114_v18 }
 0x40d   : > { %v1087_v11 = vsel %vm1047_vm1, %v1086_v10, %v1082_v9 }
 0x40e   : > { %v1089_v12 = vsel %vm1050_vm2, %v1087_v11, 0.0  ;;  %v3064_v11 = vld [vmem:[#allocation10] ss:$12 sps:$4 sm:$0xff]  }
 0x40f   : > { %1090 = vadd.xlane.f32.xlu1 %v1089_v12 }
 0x49c   : > { %v1091_v22 = vpop.xlane.xlu1 %1090 }
 0x49d   : > { %v1096_v23 = vrot.slane %v1091_v22, %v4131_v30  ;;  %v1100_v25 = vrot.slane %v1091_v22, %v4148_v60  ;;  %v3072_v22 = vld [vmem:[#allocation10 + $0x30] ss:$12 sps:$4 sm:$0xff]  }
 0x49f   : > { %3137 = vrcp.f32 %v1096_v23  ;;  %v3075_v23 = vld [vmem:[#allocation10 + $0x38] ss:$12 sps:$4 sm:$0xff]  }
 0x4a0   : > { %3139 = vrcp.f32 %v1100_v25  ;;  %v3078_v25 = vld [vmem:[#allocation10 + $0x4c] ss:$12 sps:$4 sm:$0xff]  }
 0x4a9   : > { %v3138_v26 = vpop.eup %3137 }
 0x4aa   : > { %v1104_v27 = vmul.f32 %v3138_v26, %v3134_v5  ;;  %v3140_v28 = vpop.eup %3139  ;;  %v3076_v26 = vld [vmem:[#allocation10 + $0x48] ss:$12 sps:$4 sm:$0xff]  }
 0x4ab   : > { %v1106_v33 = vmul.f32 %v3140_v28, %v3136_v6  ;;  %v3082_v28 = vld [vmem:[#allocation10 + $0x64] ss:$12 sps:$4 sm:$0xff]  }
 0x4ac   : > { %1111 = vperm.xlu0 %3014, %v1104_v27   ;;  %v3079_v27 = vld [vmem:[#allocation10 + $0x50] ss:$12 sps:$4 sm:$0xff]  }
 0x4b0   : > { %1116 = vperm.xlu0 %3014, %v1106_v33   ;;  %v3084_v33 = vld [vmem:[#allocation10 + $0x78] ss:$12 sps:$4 sm:$0xff]  }
 0x52b   : > { %v1112_v51 = vpop.permute.xlu0 %1111 }
 0x52c   : > { %v1119_v52 = vmul.f32 %v1112_v51, %v1107_v50  ;;  %v3122_v50 = vld [vmem:[#allocation13 + $0x38] ss:$12 sps:$4 sm:$0xff]  }
 0x52d   : > { %v3107_v51 = vld [vmem:[#allocation13 + $0x4c] ss:$12 sps:$4 sm:$0xff]  }
 0x52e   : > { %v1121_v54 = vrot.slane %v1119_v52, 4 }
 0x52f   : > { %v1117_v55 = vpop.permute.xlu0 %1116 }
 0x530   : > { %v1122_v56 = vadd.f32 %v1121_v54, %v1119_v52  ;;  %v1120_v57 = vmul.f32 %v1117_v55, %v1108_v53  ;;  %v3105_v52 = vld [vmem:[#allocation13 + $0x48] ss:$12 sps:$4 sm:$0xff]   ;;  %v3123_v53 = vld [vmem:[#allocation13 + $0x50] ss:$12 sps:$4 sm:$0xff]  }
 0x531   : > { %v3110_v54 = vld [vmem:[#allocation13 + $0x64] ss:$12 sps:$4 sm:$0xff]   ;;  %v3124_v55 = vld [vmem:[#allocation13 + $0x68] ss:$12 sps:$4 sm:$0xff]  }
 0x532   : > { %v1123_v58 = vrot.slane %v1122_v56, 2  ;;  %v1127_v61 = vrot.slane %v1120_v57, 4 }
 0x534   : > { %v1124_v62 = vadd.f32 %v1123_v58, %v1122_v56  ;;  %v1128_v63 = vadd.f32 %v1127_v61, %v1120_v57  ;;  %v3113_v56 = vld [vmem:[#allocation13 + $0x7c] ss:$12 sps:$4 sm:$0xff]   ;;  %v3111_v57 = vld [vmem:[#allocation13 + $0x78] ss:$12 sps:$4 sm:$0xff]   ;;  %v3125_v58 = vld [vmem:[#allocation13 + $0x80] ss:$12 sps:$4 sm:$0xff]  }
 0x535   : > { %v3116_v61 = vld [vmem:[#allocation13 + $0x94] ss:$12 sps:$4 sm:$0xff]  }
 0x536   : > { %v1125_v0 = vrot.slane %v1124_v62, 1  ;;  %v1129_v2 = vrot.slane %v1128_v63, 2 }
 0x538   : > { %v1126_v3 = vadd.f32 %v1125_v0, %v1124_v62  ;;  %v1130_v4 = vadd.f32 %v1129_v2, %v1128_v63  ;;  %v3114_v62 = vld [vmem:[#allocation13 + $0x90] ss:$12 sps:$4 sm:$0xff]   ;;  %v3126_v63 = vld [vmem:[#allocation13 + $0x98] ss:$12 sps:$4 sm:$0xff]   ;;  %v3118_v2 = vld [vmem:[#allocation13 + $0xa8] ss:$12 sps:$4 sm:$0xff]  }
 0x539   : > { %v3120_v0 = vld [vmem:[#allocation13 + $0xac] ss:$12 sps:$4 sm:$0xff]  }
 0x53a   : > { %v1131_v5 = vrot.slane %v1130_v4, 1  ;;  %v1133_v6 = vpack.c.bf16 %v1126_v3, %v1126_v3 }
 0x53c   : > { %v1132_v7 = vadd.f32 %v1131_v5, %v1130_v4  ;;  %v1201_v18 = vunpack.c.l.b16 %v1133_v6 }
 0x53e   : > { %v1134_v8 = vpack.c.bf16 %v1132_v7, %v1132_v7  ;;  %v1927_v9 = vsel %vm1047_vm1, %v1132_v7, %v1126_v3  ;;  %v3127_v3 = vld [vmem:[#allocation13 + $0xb0] ss:$12 sps:$4 sm:$0xff]  }
 0x53f   : > { %1929 = vst [vmem:[#allocation3] sm:$0x3] %v1927_v9 }
 0x540   : > { %v1202_v10 = vunpack.c.l.b16 %v1134_v8 }
 0x542   : > { %v1203_v12 = vsel %vm1047_vm1, %v1202_v10, %v1201_v18 }
 0x543   : > { %v1204_v14 = vpack.c.b16 %v1203_v12, %v1203_v12  ;;  %v1676_v12 = vld [vmem:[%s4455_s16] sm:$0x7] }
 0x545   : > { %1367 = vmatmul.mubr.bf16.vlgmr.msra.gmra.mrb[4].mxu0 %v1204_v14  ;;  %2758 = vmatmul.mubr.bf16.vlgmr.msra.gmra.mrb[4].mxu1 %v1204_v14 }
 0x546   : > { %1544 = vmatpush1.bf16.msra.mxu0 %v3064_v11  ;;  %2762 = vmatpush3.bf16.msra.mxu1 %v3067_v13 }
 0x547   : > { %1545 = vmatprep.subr.bf16.mxu0 %v3070_v15  ;;  %2763 = vmatprep.subr.bf16.mxu1 %v3592_v1  ;;  %v1685_v15 = vrot.slane %v1676_v12, %v4148_v60 }
 0x548   : > { %2777 = vmatprep.mubr.msk.bf16.mxu1 %vm3593_vm0, %v3592_v1  ;;  %1575 = vmatprep.mubr.bf16.mxu0 %v3595_v59 }
 0x54a   : > { %1546 = vmatpush1.bf16.msra.mxu0 %v3068_v17  ;;  %2764 = vmatpush3.bf16.msra.mxu1 %v3071_v20 }
 0x54b   : > { %1547 = vmatprep.subr.bf16.mxu0 %v3074_v21  ;;  %2765 = vmatprep.subr.bf16.mxu1 %v3592_v1 }
 0x54e   : > { %1548 = vmatpush1.bf16.msra.mxu0 %v3072_v22  ;;  %2766 = vmatpush3.bf16.msra.mxu1 %v3075_v23 }
 0x54f   : > { %1549 = vmatprep.subr.bf16.mxu0 %v3078_v25  ;;  %2767 = vmatprep.subr.bf16.mxu1 %v3592_v1 }
 0x552   : > { %1550 = vmatpush1.bf16.msra.mxu0 %v3076_v26  ;;  %2768 = vmatpush3.bf16.msra.mxu1 %v3079_v27 }
 0x553   : > { %1551 = vmatprep.subr.bf16.mxu0 %v3082_v28  ;;  %2769 = vmatprep.subr.bf16.mxu1 %v3592_v1 }
 0x556   : > { %1552 = vmatpush1.bf16.msra.mxu0 %v3080_v29  ;;  %2770 = vmatpush3.bf16.msra.mxu1 %v3083_v31 }
 0x557   : > { %1553 = vmatprep.subr.bf16.mxu0 %v3086_v32  ;;  %2771 = vmatprep.subr.bf16.mxu1 %v3592_v1 }
 0x55a   : > { %1554 = vmatpush1.bf16.msra.mxu0 %v3084_v33  ;;  %2772 = vmatpush3.bf16.msra.mxu1 %v3087_v34 }
 0x55b   : > { %1555 = vmatprep.subr.bf16.mxu0 %v3090_v35  ;;  %2773 = vmatprep.subr.bf16.mxu1 %v3592_v1 }
 0x55e   : > { %1556 = vmatpush1.bf16.msra.mxu0 %v3088_v36  ;;  %2774 = vmatpush3.bf16.msra.mxu1 %v3091_v37 }
 0x55f   : > { %1557 = vmatprep.subr.bf16.mxu0 %v3094_v38  ;;  %2775 = vmatprep.subr.bf16.mxu1 %v3592_v1 }
 0x562   : > { %1558 = vmatpush1.bf16.msra.mxu0 %v3092_v39  ;;  %2776 = vmatpush3.bf16.msra.mxu1 %v3095_v40 }
 0x563   : > { %1821 = vmatprep.subr.bf16.mxu0 %v3098_v41  ;;  %2781 = vmatprep.subr.bf16.mxu1 %v3592_v1 }
 0x565   : > { %2778 = vmatmul.mubr.bf16.vlgmr.msra.gmra.mrb[8].mxu1 %v756_v42  ;;  %1576 = vmatmul.mubr.bf16.vlgmr.msra.gmra.mrb[4].mxu0 %v756_v42 }
 0x566   : > { %1822 = vmatpush1.bf16.msra.mxu0 %v3096_v43  ;;  %2782 = vmatpush3.bf16.msra.mxu1 %v3117_v44 }
 0x567   : > { %1823 = vmatprep.subr.bf16.mxu0 %v3101_v45  ;;  %2783 = vmatprep.subr.bf16.mxu1 %v3592_v1 }
 0x568   : > { %1853 = vmatprep.mubr.bf16.mxu0 %v3595_v59  ;;  %2797 = vmatprep.mubr.msk.bf16.mxu1 %vm3593_vm0, %v3592_v1  ;;  %v3108_v59 = vld [vmem:[#allocation13 + $0x60] ss:$12 sps:$4 sm:$0xff]  }
 0x56a   : > { %1824 = vmatpush1.bf16.msra.mxu0 %v3099_v46  ;;  %2784 = vmatpush3.bf16.msra.mxu1 %v3121_v47 }
 0x56b   : > { %1825 = vmatprep.subr.bf16.mxu0 %v3104_v48  ;;  %2785 = vmatprep.subr.bf16.mxu1 %v3592_v1 }
 0x56e   : > { %1826 = vmatpush1.bf16.msra.mxu0 %v3102_v49  ;;  %2786 = vmatpush3.bf16.msra.mxu1 %v3122_v50 }
 0x56f   : > { %1827 = vmatprep.subr.bf16.mxu0 %v3107_v51  ;;  %2787 = vmatprep.subr.bf16.mxu1 %v3592_v1 }
 0x572   : > { %1828 = vmatpush1.bf16.msra.mxu0 %v3105_v52  ;;  %2788 = vmatpush3.bf16.msra.mxu1 %v3123_v53 }
 0x573   : > { %1829 = vmatprep.subr.bf16.mxu0 %v3110_v54  ;;  %2789 = vmatprep.subr.bf16.mxu1 %v3592_v1 }
 0x576   : > { %1830 = vmatpush1.bf16.msra.mxu0 %v3108_v59  ;;  %2790 = vmatpush3.bf16.msra.mxu1 %v3124_v55 }
 0x577   : > { %1831 = vmatprep.subr.bf16.mxu0 %v3113_v56  ;;  %2791 = vmatprep.subr.bf16.mxu1 %v3592_v1 }
 0x57a   : > { %1832 = vmatpush1.bf16.msra.mxu0 %v3111_v57  ;;  %2792 = vmatpush3.bf16.msra.mxu1 %v3125_v58 }
 0x57b   : > { %1833 = vmatprep.subr.bf16.mxu0 %v3116_v61  ;;  %2793 = vmatprep.subr.bf16.mxu1 %v3592_v1 }
 0x57e   : > { %1834 = vmatpush1.bf16.msra.mxu0 %v3114_v62  ;;  %2794 = vmatpush3.bf16.msra.mxu1 %v3126_v63 }
 0x57f   : > { %1835 = vmatprep.subr.bf16.mxu0 %v3120_v0  ;;  %2795 = vmatprep.subr.bf16.mxu1 %v3592_v1  ;;  %v1624_v1 = vld [vmem:[%s4456_s2] sm:$0x7] }
 0x580   : > { %v1629_v13 = vrot.slane %v1624_v1, %v4131_v30  ;;  %v1633_v14 = vrot.slane %v1624_v1, %v4148_v60  ;;  %v1636_v60 = vsub.s32 2, %v4127_v24 }
 0x582   : > { %1836 = vmatpush1.bf16.msra.mxu0 %v3118_v2  ;;  %2796 = vmatpush3.bf16.msra.mxu1 %v3127_v3  ;;  %v2863_v21 = vadd.f32 %v1685_v15, %v1633_v14  ;;  %v1689_v36 = vrot.slane %v1676_v12, %v1636_v60  ;;  %v1637_v38 = vrot.slane %v1624_v1, %v1636_v60 }
 0x585   : > { %1854 = vmatmul.mubr.bf16.vlgmr.msra.gmra.mrb[4].mxu0 %v4120_v19  ;;  %2798 = vmatmul.mubr.bf16.vlgmr.msra.gmra.mrb[12].mxu1 %v4120_v19  ;;  %v1681_v19 = vrot.slane %v1676_v12, %v4131_v30 }
 0x587   : > { %v2861_v17 = vadd.f32 %v1681_v19, %v1629_v13 }
 0x618   : > { %v1409_v4 = vpop.f32.mrb[4].mxu1 }
 0x619   : > { %v2759_v5 = vpop.f32.mrb[5].mxu1 }
 0x61a   : > { %v1412_v6 = vpop.f32.mrb[6].mxu1 }
 0x61b   : > { %v2760_v7 = vpop.f32.mrb[7].mxu1 }
 0x638   : > { %v1618_v8 = vpop.f32.mrb[8].mxu1 }
 0x639   : > { %v1619_v9 = vadd.f32 %v1618_v8, %v1409_v4  ;;  %v2779_v18 = vpop.f32.mrb[9].mxu1 }
 0x63a   : > { %v1621_v10 = vpop.f32.mrb[10].mxu1 }
 0x63b   : > { %v2780_v11 = vpop.f32.mrb[11].mxu1  ;;  %v1643_v42 = vadd.f32 %v1637_v38, %v1619_v9 }
 0x658   : > { %v1855_v20 = vpop.f32.mrb[4].mxu0  ;;  %v1896_v22 = vpop.f32.mrb[12].mxu1 }
 0x659   : > { %v2862_v23 = vadd.f32 %v2861_v17, %v1855_v20  ;;  %v1857_v25 = vpop.f32.mrb[5].mxu0  ;;  %v2799_v26 = vpop.f32.mrb[13].mxu1  ;;  %v1897_v40 = vadd.f32 %v1896_v22, %v1689_v36 }
 0x65a   : > { %v1859_v27 = vpop.f32.mrb[6].mxu0  ;;  %v1899_v28 = vpop.f32.mrb[14].mxu1  ;;  %v2864_v33 = vadd.f32 %v2863_v21, %v1857_v25 }
 0x65b   : > { %v2596_v29 = vmul.f32 -1.442695, %v2862_v23  ;;  %v1860_v31 = vpop.f32.mrb[7].mxu0  ;;  %v2800_v32 = vpop.f32.mrb[15].mxu1 }
 0x65c   : > { %v2597_v34 = vmul.f32 -1.442695, %v2864_v33 }
 0x65d   : > { %3141 = vpow2.f32 %v2596_v29 }
 0x65e   : > { %3143 = vpow2.f32 %v2597_v34 }
 0x667   : > { %v3142_v30 = vpop.eup %3141 }
 0x668   : > { %v1906_v35 = vadd.f32 1.0, %v3142_v30  ;;  %v3144_v37 = vpop.eup %3143 }
 0x669   : > { %v1913_v39 = vadd.f32 1.0, %v3144_v37 }
 0x66a   : > { %3145 = vrcp.f32 %v1906_v35 }
 0x66b   : > { %3147 = vrcp.f32 %v1913_v39 }
 0x674   : > { %v3146_v41 = vpop.eup %3145 }
 0x675   : > { %v1916_v43 = vmul.f32 %v3146_v41, %v1897_v40  ;;  %v3148_v45 = vpop.eup %3147 }
 0x676   : > { %v1919_v46 = vsub.f32 1.0, %v3148_v45  ;;  %v1921_v48 = vmul.f32 %v3148_v45, %v4109_v16 }
 0x677   : > { %v1917_v44 = vadd.f32 %v1916_v43, %v1643_v42 }
 0x679   : > { %3149 = vtanh.f32 %v1917_v44 }
 0x683   : > { %v3150_v47 = vpop.eup %3149 }
 0x684   : > { %v1920_v49 = vmul.f32 %v3150_v47, %v1919_v46 }
 0x686   : > { %v1922_v50 = vadd.f32 %v1921_v48, %v1920_v49 }
 0x688   : > { %1923 = vst [vmem:[#allocation20] sm:$0x3] %v1922_v50  ;;  %1924 = vst [vmem:[#allocation2] sm:$0x3] %v1922_v50 }
 0x689 PF: > { %v3151_v24 = vld [vmem:[%s4082_s30] sm:$0xff]   ;;  %v3596_v51 = vmov 0.0   ;;  %v3153_v16 = vld [vmem:[%s4082_s30 + $0x8] sm:$0xff]   ;;  %vm3597_vm3 = vmmov 0   ;;  %v3155_v54 = vld [vmem:[%s4082_s30 + $0x10] sm:$0xff]   ;;  %s4457_s23 = sld [smem:[#allocation39_spill]] }
 0x68a   : > { %2801 = vmatprep.subr.bf16.mxu0 %v3596_v51  ;;  %2821 = vmatprep.subr.bf16.mxu1 %v3596_v51  ;;  %v3152_v52 = vld [vmem:[%s4075_s17] sm:$0xff]   ;;  %v3154_v53 = vld [vmem:[%s4075_s17 + $0x8] sm:$0xff]   ;;  %v3156_v59 = vld [vmem:[%s4075_s17 + $0x10] sm:$0xff]  }
 0x68b   : > { %2802 = vmatpush3.bf16.msra.mxu0 %v3151_v24  ;;  %2817 = vmatprep.mubr.msk.bf16.mxu0 %vm3597_vm3, %v3596_v51  ;;  %v3157_v55 = vld [vmem:[%s4082_s30 + $0x18] sm:$0xff]   ;;  %v3159_v57 = vld [vmem:[%s4082_s30 + $0x20] sm:$0xff]   ;;  %v3161_v61 = vld [vmem:[%s4082_s30 + $0x28] sm:$0xff]  }
 0x68c   : > { %2822 = vmatpush3.bf16.msra.mxu1 %v3152_v52  ;;  %2803 = vmatprep.subr.bf16.mxu0 %v3596_v51  ;;  %v3158_v56 = vld [vmem:[%s4075_s17 + $0x18] sm:$0xff]   ;;  %v3160_v58 = vld [vmem:[%s4075_s17 + $0x20] sm:$0xff]   ;;  %v3162_v62 = vld [vmem:[%s4075_s17 + $0x28] sm:$0xff]  }
 0x68d   : > { %2823 = vmatprep.subr.bf16.mxu1 %v3596_v51  ;;  %2837 = vmatprep.mubr.msk.bf16.mxu1 %vm3597_vm3, %v3596_v51  ;;  %v3163_v63 = vld [vmem:[%s4082_s30 + $0x30] sm:$0xff]   ;;  %v3165_v2 = vld [vmem:[%s4082_s30 + $0x38] sm:$0xff]   ;;  %v3167_v7 = vld [vmem:[%s4084_s20] sm:$0xff]   ;;  %s3598_s30 = smov [#allocation20]  }
 0x68e   : > { %v3164_v0 = vld [vmem:[%s4075_s17 + $0x30] sm:$0xff]   ;;  %v3166_v3 = vld [vmem:[%s4075_s17 + $0x38] sm:$0xff]   ;;  %v3168_v8 = vld [vmem:[%s4084_s20 + $0x8] sm:$0xff]   ;;  %s4458_s17 = sld [smem:[#allocation32_spill]]  ;;  %s2282_s0 = sshll.u32 %s3598_s30, 4  ;;  %s2283_s0 = int_to_ptr.vmem [resolvable:$true] %s2282_s0 }
 0x68f   : > { %2804 = vmatpush3.bf16.msra.mxu0 %v3153_v16  ;;  %v1931_v4 = vld [vmem:[#allocation2] sm:$0x3]  ;;  %v3169_v9 = vld [vmem:[%s4084_s20 + $0x10] sm:$0xff]   ;;  %v3171_v10 = vld [vmem:[%s4084_s20 + $0x20] sm:$0xff]   ;;  %s3463_s28 = scalar_lea.vmem %s2283_s0, 32  ;;  %p3470_p12 = scmp.lt.s32.totalorder %s2283_s0, %s2283_s0 }
 0x690   : > { %2824 = vmatpush3.bf16.msra.mxu1 %v3154_v53  ;;  %2805 = vmatprep.subr.bf16.mxu0 %v3596_v51  ;;  %v1930_v5 = vld [vmem:[%s4457_s23] sm:$0x1]  ;;  %v1932_v6 = vpack.c.bf16 %v1931_v4, %v1931_v4  ;;  %v3172_v11 = vld [vmem:[%s4084_s20 + $0x28] sm:$0xff]   ;;  %v3173_v12 = vld [vmem:[%s4084_s20 + $0x30] sm:$0xff]   ;;  %p3464_p0 = scmp.ne.s32.totalorder %s2283_s0, %s3463_s28  ;;  %p3471_p13 = scmp.lt.s32.totalorder %s3463_s28, %s3463_s28 }
 0x691   : > { %2825 = vmatprep.subr.bf16.mxu1 %v3596_v51  ;;  %v3170_v18 = vld [vmem:[%s4084_s20 + $0x18] sm:$0xff]  }
 0x692   : > { %v3174_v1 = vld [vmem:[%s4084_s20 + $0x38] sm:$0xff]   ;;  %p3472_p5 = por %p3471_p13, %p3470_p12 }
 0x693   : > { %2806 = vmatpush3.bf16.msra.mxu0 %v3155_v54  ;;  %v1933_v13 = vld [vmem:[#allocation3] sm:$0x3] }
 0x694   : > { %2826 = vmatpush3.bf16.msra.mxu1 %v3156_v59  ;;  %2807 = vmatprep.subr.bf16.mxu0 %v3596_v51  ;;  %v1934_v19 = vpack.c.bf16 %v1933_v13, %v1933_v13  ;;  %p4459_p4 = scmp.eq.s32.totalorder %s4458_s17, 1 }
 0x695   : > { %2827 = vmatprep.subr.bf16.mxu1 %v3596_v51 }
 0x696   : > { %p3465_p8 = pnand %p3464_p0, %p4459_p4 }
 0x697   : > { %2808 = vmatpush3.bf16.msra.mxu0 %v3157_v55 }
 0x698   : > { %2828 = vmatpush3.bf16.msra.mxu1 %v3158_v56  ;;  %2809 = vmatprep.subr.bf16.mxu0 %v3596_v51  ;;  %p3466_p2 = pneg %p3465_p8 }
 0x699   : > { %2829 = vmatprep.subr.bf16.mxu1 %v3596_v51 }
 0x69a   : > { %p3473_p1 = pnand %p3472_p5, %p3466_p2 }
 0x69b   : > { %2810 = vmatpush3.bf16.msra.mxu0 %v3159_v57 }
 0x69c   : > { %2830 = vmatpush3.bf16.msra.mxu1 %v3160_v58  ;;  %2811 = vmatprep.subr.bf16.mxu0 %v3596_v51 }
 0x69d   : > { %2831 = vmatprep.subr.bf16.mxu1 %v3596_v51 }
 0x69f   : > { %2812 = vmatpush3.bf16.msra.mxu0 %v3161_v61 }
 0x6a0   : > { %2832 = vmatpush3.bf16.msra.mxu1 %v3162_v62  ;;  %2813 = vmatprep.subr.bf16.mxu0 %v3596_v51 }
 0x6a1   : > { %2833 = vmatprep.subr.bf16.mxu1 %v3596_v51 }
 0x6a3   : > { %2814 = vmatpush3.bf16.msra.mxu0 %v3163_v63 }
 0x6a4   : > { %2834 = vmatpush3.bf16.msra.mxu1 %v3164_v0  ;;  %2815 = vmatprep.subr.bf16.mxu0 %v3596_v51 }
 0x6a5   : > { %2835 = vmatprep.subr.bf16.mxu1 %v3596_v51 }
 0x6a7   : > { %2816 = vmatpush3.bf16.msra.mxu0 %v3165_v2 }
 0x6a8   : > { %2836 = vmatpush3.bf16.msra.mxu1 %v3166_v3  ;;  %2841 = vmatprep.subr.bf16.mxu0 %v3596_v51 }
 0x6aa   : > { %2818 = vmatmul.mubr.bf16.vlgmr.msra.gmra.mrb[0].mxu0 %v1930_v5 }
 0x6ab   : > { %2838 = vmatmul.mubr.bf16.vlgmr.msra.gmra.mrb[0].mxu1 %v1932_v6  ;;  %2842 = vmatpush3.bf16.msra.mxu0 %v3167_v7 }
 0x6ac   : > { %2843 = vmatprep.subr.bf16.mxu0 %v3596_v51  ;;  %2857 = vmatprep.mubr.msk.bf16.mxu0 %vm3597_vm3, %v3596_v51 }
 0x6af   : > { %2844 = vmatpush3.bf16.msra.mxu0 %v3168_v8 }
 0x6b0   : > { %2845 = vmatprep.subr.bf16.mxu0 %v3596_v51 }
 0x6b3   : > { %2846 = vmatpush3.bf16.msra.mxu0 %v3169_v9 }
 0x6b4   : > { %2847 = vmatprep.subr.bf16.mxu0 %v3596_v51 }
 0x6b7   : > { %2848 = vmatpush3.bf16.msra.mxu0 %v3170_v18 }
 0x6b8   : > { %2849 = vmatprep.subr.bf16.mxu0 %v3596_v51 }
 0x6bb   : > { %2850 = vmatpush3.bf16.msra.mxu0 %v3171_v10 }
 0x6bc   : > { %2851 = vmatprep.subr.bf16.mxu0 %v3596_v51 }
 0x6bf   : > { %2852 = vmatpush3.bf16.msra.mxu0 %v3172_v11 }
 0x6c0   : > { %2853 = vmatprep.subr.bf16.mxu0 %v3596_v51 }
 0x6c3   : > { %2854 = vmatpush3.bf16.msra.mxu0 %v3173_v12 }
 0x6c4   : > { %2855 = vmatprep.subr.bf16.mxu0 %v3596_v51 }
 0x6c7   : > { %2856 = vmatpush3.bf16.msra.mxu0 %v3174_v1 }
 0x6ca   : > { %2858 = vmatmul.mubr.bf16.vlgmr.msra.gmra.mrb[4].mxu0 %v1934_v19 }
 0x6cb   : > { %3476 = shalt.err (!%p3473_p1)
}
 0x6cc   : > { %s4460_s12 = sld [smem:[#allocation49_spill]]  ;;  %p4461_p7 = pmov %p4459_p4 }
 0x6d2   : > { %s3477_s22 = scalar_lea.hbm %s4460_s12, 32 }
 0x6d3   : > { %p3478_p6 = scmp.ne.s32.totalorder %s4460_s12, %s3477_s22  ;;  %p3483_p11 = scmp.lt.u32.totalorder %s3477_s22, %s4460_s12 }
 0x6d5   : > { %p3479_p10 = pnand %p3478_p6, %p4461_p7 }
 0x6d7   : > { %p3480_p3 = pneg %p3479_p10 }
 0x6d9   : > { %p3485_p9 = pnand %p3483_p11, %p3480_p3 }
 0x6db   : > { %3488 = shalt.err (!%p3485_p9)
}
 0x6dc   : > { %p4462_p0 = pmov %p4459_p4  ;;  %s4463_s15 = sld [smem:[#allocation38_spill]]  ;;  %v2622_v28 = vld [vmem:[%s686_s21] ss:$0 sm:$0xff] }
 0x6dd   : > { %s2624_s2 = sshll.u32 %s4458_s17, 5  ;;  %s2271_s1 = sshll.u32 %s4087_s9, 4  ;;  %s4290_s1 = int_to_ptr.vmem [resolvable:$true] %s2271_s1 }
 0x6de   : > { %2907 = dma.vmem_to_hbm [thread:$0]  (%p4462_p0), %s2283_s0, 32, %s4460_s12, [#allocation21]  }
 0x6df   : > { %s4464_s30 = sld [smem:[#allocation48_spill]]  ;;  %s2258_s28 = scalar_lea.sflag [#allocation6], %s4072_s6 }
 0x6e0   : > { %s3489_s21 = scalar_lea.vmem %s4290_s1, 32  ;;  %s3599_s20 = smov [#allocation19]  }
 0x6e1   : > { %p3490_p4 = scmp.ne.s32.totalorder %s4290_s1, %s3489_s21  ;;  %s3493_s11 = sshll.u32 %s3599_s20, 4  ;;  %s3494_s11 = int_to_ptr.vmem [resolvable:$false] %s3493_s11 }
 0x6e2   : > { %p4465_p8 = scmp.ne.s32.totalorder %s4463_s15, 0  ;;  %s3495_s22 = scalar_lea.vmem %s3494_s11, 64 }
 0x6e3   : > { %p3496_p13 = scmp.lt.s32.totalorder %s4290_s1, %s3494_s11  ;;  %p3497_p5 = scmp.lt.s32.totalorder %s3495_s22, %s3489_s21 }
 0x6e4   : > { %p3491_p2 = pnand %p3490_p4, %p4465_p8 }
 0x6e5   : > { %s4288_s0 = scalar_lea.hbm %s4464_s30, %s2624_s2  ;;  %p3498_p1 = por %p3497_p5, %p3496_p13 }
 0x6e6   : > { %p3492_p12 = pneg %p3491_p2 }
 0x6e8   : > { %p3499_p6 = pnand %p3498_p1, %p3492_p12 }
 0x77d   : > { %v2049_v14 = vpop.f32.mrb[0].mxu0 }
 0x77e   : > { %v2819_v15 = vpop.f32.mrb[1].mxu0  ;;  %v2137_v17 = vpop.f32.mrb[0].mxu1 }
 0x77f   : > { %v2138_v20 = vadd.f32 %v2137_v17, %v2049_v14  ;;  %v2052_v21 = vpop.f32.mrb[2].mxu0  ;;  %v2839_v22 = vpop.f32.mrb[1].mxu1 }
 0x780   : > { %v2820_v23 = vpop.f32.mrb[3].mxu0  ;;  %v2140_v25 = vpop.f32.mrb[2].mxu1 }
 0x781   : > { %v2840_v26 = vpop.f32.mrb[3].mxu1 }
 0x79d   : > { %v2241_v27 = vpop.f32.mrb[4].mxu0 }
 0x79e   : > { %v2247_v29 = vadd.f32 %v2241_v27, %v2138_v20  ;;  %v2859_v31 = vpop.f32.mrb[5].mxu0 }
 0x79f   : > { %v2244_v32 = vpop.f32.mrb[6].mxu0 }
 0x7a0   : > { %v2255_v33 = vadd.f32 %v2622_v28, %v2247_v29  ;;  %v2860_v34 = vpop.f32.mrb[7].mxu0 }
 0x7a2   : > { %2256 = vst [vmem:[%s4087_s9] sm:$0x3] %v2255_v33 }
 0x7a3   : > { %3502 = shalt.err (!%p3499_p6)
}
 0x7a4   : > { %s3503_s6 = scalar_lea.hbm %s4288_s0, 32  ;;  %s3507_s19 = scalar_lea.hbm %s4464_s30, 64 }
 0x7a5   : > { %p3504_p7 = scmp.ne.s32.totalorder %s4288_s0, %s3503_s6  ;;  %p3508_p11 = scmp.lt.u32.totalorder %s4288_s0, %s4464_s30 }
 0x7a6   : > { %p3509_p9 = scmp.lt.u32.totalorder %s3507_s19, %s3503_s6  ;;  %p3511_p4 = scmp.lt.u32.totalorder %s3503_s6, %s4288_s0 }
 0x7a7   : > { %p3505_p10 = pnand %p3504_p7, %p4465_p8 }
 0x7a8   : > { %p3510_p0 = por %p3509_p9, %p3508_p11 }
 0x7a9   : > { %p3506_p3 = pneg %p3505_p10 }
 0x7aa   : > { %p3512_p2 = por %p3511_p4, %p3510_p0 }
 0x7ac   : > { %p3513_p12 = pnand %p3512_p2, %p3506_p3 }
 0x7ae   : > { %3516 = shalt.err (!%p3513_p12)
}
 0x7af   : > { %2905 = dma.vmem_to_hbm [thread:$0]  (%p4465_p8), %s4290_s1, 32, %s4288_s0, %s2258_s28  }
 0x7b0   : > { %p4466_p13 = scmp.eq.s32.totalorder %s4458_s17, 1 }
 0x7b2   : > { %3554 = dma.done.wait (%p4466_p13), [#allocation21], 32   ;;  %p4467_p5 = pmov %p4466_p13 }
 0x7b4   : > { %3556 = vsyncadd (%p4467_p5), [#allocation21], 4294967264 }
 0x7b5 PF: > { %s4468_s16 = sld [smem:[#allocation29_spill]]  ;;  %s4469_s24 = sld [smem:[#allocation34_spill]] }
 0x7b6   : > { %p4471_p6 = scmp.ge.s32.totalorder %s3575_s27, 2 }
 0x7bb   : > { %s2298_s2 = sand.u32 1, %s4468_s16   ;;  %p4470_p1 = scmp.ne.s32.totalorder %s4469_s24, 0 }
 0x7bc   : > { %s2299_s25 = scalar_lea.sflag [#allocation6], %s2298_s2 }
 0x7bd   : > { %p2944_p7 = pnand %p4471_p6, %p4470_p1 }
 0x7bf   : > { %3558 = dma.done.wait (!%p2944_p7), %s2299_s25, 32  }
 0x7c0   : > { %3560 = vsyncadd (!%p2944_p7), %s2299_s25, 4294967264  ;;  %s4472_s27 = sld [smem:[#allocation36_spill]]  ;;  %s4473_s24 = sld [smem:[#allocation30_spill]] }
 0x7c1   : > { %s4474_s25 = sld [smem:[#allocation31_spill]]  ;;  %s4475_s26 = sld [smem:[#allocation37_spill]] }
 0x7c6   : > { %p33_p8 = scmp.ge.s32.totalorder %s4472_s27, 4  }
 0x7c8   :  { %35 = sbr.rel (!%p33_p8) target bundleno = 20 (0x14), region = 197 }
 0x7cf   :  { %2304 = vsyncpa [#allocation5], 1 }
 0x7d0   :  { %2306 = vsyncpa [#allocation5 + $0x1], 1 }
 0x7d1   :  { %2307 = vsyncpa [#allocation8], 1 }
 0x7d2   :  { %2308 = vsyncpa [#allocation11], 1 }
 0x7d3   :  { %2309 = vsyncpa [#allocation14], 1 }
 0x7d4   :  { %2310 = vsyncpa [#allocation6], 1 }
 0x7d5   :  { %2312 = vsyncpa [#allocation6 + $0x1], 1 }
 0x7d6   :  { %2313 = vsyncpa [#allocation21], 1 }

</bundles_post_ra>
